<compile_context>
chip_gen: v7x
topology: tpu7x:2x2x1
jax: 0.10.0
libtpu: 0.0.40
codegen_flags: <defaults>
</compile_context>

<pallas_src>
import functools
import math

import jax
import jax.numpy as jnp
from jax.experimental import pallas as pl
from jax.experimental.pallas import tpu as pltpu

HIDDEN = 256
TILE_B_MAX = 1024                 # large batch tiles amortize grid-step + weight-push cost
VMEM_LIMIT_BYTES = 40 * 1024 * 1024   # explicit scoped-VMEM limit (safe on v5e/v6e/v7x)


def _round_up(n, m):
    return ((n + m - 1) // m) * m


def _act_dtype():
    """bf16 activations on chips with a bf16 VALU (v6e/v7x); f32 elsewhere."""
    try:
        kind = jax.devices()[0].device_kind.lower()
    except Exception:
        return jnp.float32
    if "v6" in kind or "v7" in kind or "7x" in kind:
        return jnp.bfloat16
    return jnp.float32


def _choose_tile_b(batch, input_dim, n_out, action_dim):
    """Pick the batch tile: big (amortization), >=2 tiles for v7x, VMEM-safe."""
    # Conservative f32-based per-row VMEM estimate (x double-buffered, activations,
    # bf16 matmul operand copies, q double-buffered).
    per_row = (input_dim * 8
               + (2 * HIDDEN + 2 * HIDDEN + 2 * HIDDEN + n_out) * 4
               + 4 * HIDDEN * 2
               + action_dim * 8)
    tmax = min(TILE_B_MAX, max(64, ((VMEM_LIMIT_BYTES // 2) // per_row) // 8 * 8))
    if batch <= 16:
        return _round_up(batch, 8)          # trivially small: one rounded tile
    # >= 2 tiles whenever the batch is non-trivial so both v7x TensorCores get work.
    return min(_round_up((batch + 1) // 2, 8), tmax)


def dueldqn_kernel(x_ref, wf_ref, w1_ref, wa2_ref, wv2_ref, wa3_ref, aux_ref,
                   q_ref, psum_ref, *, batch, act_dtype):
    i = pl.program_id(0)
    tile_b = x_ref.shape[0]
    hidden = wf_ref.shape[1]
    n_out = wa3_ref.shape[1]
    action_dim = q_ref.shape[1]

    aux = aux_ref[...]                            # (8, AUXW) f32: packed biases + wv3 row
    b1 = aux[0:1, : 2 * hidden].astype(act_dtype)   # fused layer-1 bias [ba1 | bv1]
    bf = aux[1:2, :hidden].astype(act_dtype)
    ba2 = aux[2:3, :hidden].astype(act_dtype)
    bv2 = aux[3:4, :hidden].astype(act_dtype)
    ba3 = aux[4:5, :n_out]                          # final layer stays f32
    bv3 = aux[5:6, 0:1]
    wv3 = aux[6:7, :hidden]                         # value-head weight row (VPU path)

    def mm(h, w_ref):
        # bf16 operands on the MXU, f32 accumulation.
        return jnp.dot(h.astype(jnp.bfloat16), w_ref[...],
                       preferred_element_type=jnp.float32)

    def layer(h, w_ref, b):
        # bias-add / ReLU in act_dtype (bf16 on v6e/v7x, f32 on v5e).
        return jnp.maximum(mm(h, w_ref).astype(act_dtype) + b, 0.0)

    x = x_ref[...]
    f = layer(x, wf_ref, bf)                        # (tb, 256)

    # Fused first layer of both branches: one (256, 512) matmul.
    h1 = layer(f, w1_ref, b1)                       # (tb, 512)
    a1 = h1[:, :hidden]
    v1 = h1[:, hidden:]

    a2 = layer(a1, wa2_ref, ba2)                    # (tb, 256)
    v2 = layer(v1, wv2_ref, bv2)                    # (tb, 256)

    adv = mm(a2, wa3_ref) + ba3                     # (tb, n_out) f32, lane-dense matmul
    # Value head on VPU + XLU lane-reduce instead of an N=1 MXU matmul.
    val = jnp.sum(v2.astype(jnp.float32) * wv3, axis=-1, keepdims=True) + bv3   # (tb, 1)

    # Narrow q store: only the real action_dim lanes go back to HBM.
    q_ref[...] = val + adv[:, :action_dim]          # global mean subtracted in wrapper

    # Per-lane column partial sums of adv for the GLOBAL mean.
    # Padded batch rows are masked out; padded action lanes are exactly zero by
    # construction (wa3 / ba3 padding), so summing all n_out lanes is exact.
    rows = i * tile_b + jax.lax.broadcasted_iota(jnp.int32, (tile_b, 1), 0)
    adv_valid = jnp.where(rows < batch, adv, 0.0)
    psum_ref[...] = jnp.sum(adv_valid, axis=0, keepdims=True)[None]   # (1, 1, n_out)


def pack_params(p, action_dim):
    """Pack f32 PyTorch-layout params into the kernel layout (bf16 weights).

    INVARIANT (do not break): the padded columns of wa3 and the padded lanes of the
    ba3 row in `aux` must stay exactly zero — the in-kernel unmasked lane sum for
    adv.mean() relies on it.
    """
    n_out = _round_up(max(action_dim, 1), 128)
    auxw = max(2 * HIDDEN, n_out)
    wf = p["wf"].astype(jnp.bfloat16)
    w1 = jnp.concatenate([p["wa1"], p["wv1"]], axis=1).astype(jnp.bfloat16)   # (256, 512)
    wa2 = p["wa2"].astype(jnp.bfloat16)
    wv2 = p["wv2"].astype(jnp.bfloat16)
    wa3 = jnp.zeros((HIDDEN, n_out), jnp.float32)
    wa3 = wa3.at[:, :action_dim].set(p["wa3"]).astype(jnp.bfloat16)
    aux = jnp.zeros((8, auxw), jnp.float32)
    aux = aux.at[0, : 2 * HIDDEN].set(jnp.concatenate([p["ba1"][0], p["bv1"][0]]))
    aux = aux.at[1, :HIDDEN].set(p["bf"][0])
    aux = aux.at[2, :HIDDEN].set(p["ba2"][0])
    aux = aux.at[3, :HIDDEN].set(p["bv2"][0])
    aux = aux.at[4, :action_dim].set(p["ba3"][0])
    aux = aux.at[5, 0].set(p["bv3"][0, 0])
    aux = aux.at[6, :HIDDEN].set(p["wv3"][:, 0])
    return dict(wf=wf, w1=w1, wa2=wa2, wv2=wv2, wa3=wa3, aux=aux,
                action_dim=action_dim)


def dueldqn_forward(x, pk):
    B, input_dim = x.shape
    action_dim = pk["action_dim"]
    n_out = pk["wa3"].shape[1]

    tile_b = _choose_tile_b(B, input_dim, n_out, action_dim)
    b_pad = _round_up(B, tile_b)
    num_tiles = b_pad // tile_b
    xp = x if b_pad == B else jnp.pad(x, ((0, b_pad - B), (0, 0)))

    weights = (pk["wf"], pk["w1"], pk["wa2"], pk["wv2"], pk["wa3"])
    act_dtype = _act_dtype()

    flops = 2 * b_pad * (input_dim * HIDDEN + HIDDEN * 2 * HIDDEN
                         + 2 * HIDDEN * HIDDEN + HIDDEN * n_out + HIDDEN)
    bytes_accessed = (xp.size * 4 + sum(int(w.size) * 2 for w in weights)
                      + int(pk["aux"].size) * 4
                      + b_pad * action_dim * 4 + num_tiles * n_out * 4)

    kernel = functools.partial(dueldqn_kernel, batch=B, act_dtype=act_dtype)

    def run(use_buffered):
        # Constant-index weights: single-buffered (fetched once, VMEM-resident).
        wkw = dict(pipeline_mode=pl.Buffered(1)) if use_buffered else {}
        const_map = lambda i: (0, 0)
        grid_spec = pltpu.PrefetchScalarGridSpec(
            num_scalar_prefetch=0,
            grid=(num_tiles,),
            in_specs=[
                pl.BlockSpec((tile_b, input_dim), lambda i: (i, 0)),     # x tile
                pl.BlockSpec(pk["wf"].shape, const_map, **wkw),
                pl.BlockSpec(pk["w1"].shape, const_map, **wkw),
                pl.BlockSpec(pk["wa2"].shape, const_map, **wkw),
                pl.BlockSpec(pk["wv2"].shape, const_map, **wkw),
                pl.BlockSpec(pk["wa3"].shape, const_map, **wkw),
                pl.BlockSpec(pk["aux"].shape, const_map, **wkw),
            ],
            out_specs=[
                pl.BlockSpec((tile_b, action_dim), lambda i: (i, 0)),    # narrow q
                pl.BlockSpec((1, 1, n_out), lambda i: (i, 0, 0)),        # adv column sums
            ],
        )
        return pl.pallas_call(
            kernel,
            out_shape=(jax.ShapeDtypeStruct((b_pad, action_dim), jnp.float32),
                       jax.ShapeDtypeStruct((num_tiles, 1, n_out), jnp.float32)),
            grid_spec=grid_spec,
            compiler_params=pltpu.CompilerParams(
                dimension_semantics=("parallel",),
                vmem_limit_bytes=VMEM_LIMIT_BYTES),
            cost_estimate=pl.CostEstimate(flops=flops, transcendentals=0,
                                          bytes_accessed=bytes_accessed),
        )(xp, *weights, pk["aux"])

    try:
        q, psum = run(use_buffered=True)
    except Exception:
        # Fallback for JAX builds where pipeline_mode on top-level BlockSpecs is
        # unsupported; everything else (tiling, narrow outputs, bf16 act) is kept.
        q, psum = run(use_buffered=False)

    # Global adv.mean(): plain sum of the per-tile column partial sums (padded lanes
    # are exactly zero), then a cheap mean-subtract on the already-narrow q.
    adv_mean = jnp.sum(psum) / (B * action_dim)
    return q[:B] - adv_mean


# ------------------------ init & reference (for testing) ------------------------

def init_linear(key, fan_in, fan_out):
    # Deterministic init mimicking PyTorch nn.Linear default (uniform +-1/sqrt(fan_in)).
    k_w, k_b = jax.random.split(key)
    bound = 1.0 / math.sqrt(fan_in)
    w = jax.random.uniform(k_w, (fan_in, fan_out), jnp.float32, -bound, bound)
    b = jax.random.uniform(k_b, (1, fan_out), jnp.float32, -bound, bound)
    return w, b


def init_params(key, input_dim, action_dim, hidden=HIDDEN):
    keys = jax.random.split(key, 7)
    wf, bf = init_linear(keys[0], input_dim, hidden)
    wa1, ba1 = init_linear(keys[1], hidden, hidden)
    wa2, ba2 = init_linear(keys[2], hidden, hidden)
    wa3, ba3 = init_linear(keys[3], hidden, action_dim)
    wv1, bv1 = init_linear(keys[4], hidden, hidden)
    wv2, bv2 = init_linear(keys[5], hidden, hidden)
    wv3, bv3 = init_linear(keys[6], hidden, 1)
    return dict(
        wf=wf, bf=bf,
        wa1=wa1, ba1=ba1, wa2=wa2, ba2=ba2, wa3=wa3, ba3=ba3,
        wv1=wv1, bv1=bv1, wv2=wv2, bv2=bv2, wv3=wv3, bv3=bv3,
    )


def reference_forward(x, p, act_dtype):
    """Pure-JAX reference using the same precision policy as the kernel."""
    def mm(h, w):
        return jnp.dot(h.astype(jnp.bfloat16), w.astype(jnp.bfloat16),
                       preferred_element_type=jnp.float32)

    def layer(h, w, b):
        return jnp.maximum(mm(h, w).astype(act_dtype) + b.astype(act_dtype), 0.0)

    f = layer(x, p["wf"], p["bf"])
    a = layer(f, p["wa1"], p["ba1"])
    a = layer(a, p["wa2"], p["ba2"])
    adv = mm(a, p["wa3"]) + p["ba3"]
    v = layer(f, p["wv1"], p["bv1"])
    v = layer(v, p["wv2"], p["bv2"])
    val = jnp.sum(v.astype(jnp.float32) * p["wv3"][:, 0], axis=-1, keepdims=True) + p["bv3"]
    return val + adv - jnp.mean(adv)    # scalar mean over ALL elements


if __name__ == "__main__":
    input_dim, action_dim, batch = 32, 8, 2
    key = jax.random.PRNGKey(0)
    k_x, k_p = jax.random.split(key)

    x = jax.random.normal(k_x, (batch, input_dim), jnp.float32)
    params = init_params(k_p, input_dim, action_dim)
    packed = pack_params(params, action_dim)

    out = jax.block_until_ready(dueldqn_forward(x, packed))
    ref = jax.block_until_ready(reference_forward(x, params, _act_dtype()))

    assert out.shape == (batch, action_dim)
    max_diff = float(jnp.max(jnp.abs(out - ref)))
    assert jnp.allclose(out, ref, atol=1e-2, rtol=1e-2), f"mismatch (max abs diff {max_diff})"

    print("KERNEL_OK")
</pallas_src>

<mosaic_0001>
module attributes {stable_mosaic.version = 11 : i64} {
  func.func @dueldqn_kernel(%arg0: i32, %arg1: memref<8x32xf32, #tpu.memory_space<vmem>>, %arg2: memref<32x256xbf16, #tpu.memory_space<vmem>>, %arg3: memref<256x512xbf16, #tpu.memory_space<vmem>>, %arg4: memref<256x256xbf16, #tpu.memory_space<vmem>>, %arg5: memref<256x256xbf16, #tpu.memory_space<vmem>>, %arg6: memref<256x128xbf16, #tpu.memory_space<vmem>>, %arg7: memref<8x512xf32, #tpu.memory_space<vmem>>, %arg8: memref<8x8xf32, #tpu.memory_space<vmem>>, %arg9: memref<1x1x128xf32, #tpu.memory_space<vmem>>) attributes {dimension_semantics = [#tpu.dimension_semantics<parallel>], iteration_bounds = array<i64: 1>, scalar_prefetch = 0 : i64, scratch_operands = 0 : i64, tpu.core_type = #tpu.core_type<tc>, window_params = [{transform_indices = @transform_0, window_bounds = array<i64: 8, 32>}, {pipeline_mode = #tpu.pipeline_mode<synchronous>, transform_indices = @transform_1, window_bounds = array<i64: 32, 256>}, {pipeline_mode = #tpu.pipeline_mode<synchronous>, transform_indices = @transform_2, window_bounds = array<i64: 256, 512>}, {pipeline_mode = #tpu.pipeline_mode<synchronous>, transform_indices = @transform_3, window_bounds = array<i64: 256, 256>}, {pipeline_mode = #tpu.pipeline_mode<synchronous>, transform_indices = @transform_4, window_bounds = array<i64: 256, 256>}, {pipeline_mode = #tpu.pipeline_mode<synchronous>, transform_indices = @transform_5, window_bounds = array<i64: 256, 128>}, {pipeline_mode = #tpu.pipeline_mode<synchronous>, transform_indices = @transform_6, window_bounds = array<i64: 8, 512>}, {transform_indices = @transform_7, window_bounds = array<i64: 8, 8>}, {transform_indices = @transform_8, window_bounds = array<i64: 1, 1, 128>}]} {
    %c0 = arith.constant 0 : index
    %c0_0 = arith.constant 0 : index
    %0 = vector.load %arg7[%c0, %c0_0] : memref<8x512xf32, #tpu.memory_space<vmem>>, vector<8x512xf32>
    %1 = vector.extract_strided_slice %0 {offsets = [0, 0], sizes = [1, 512], strides = [1, 1]} : vector<8x512xf32> to vector<1x512xf32>
    %2 = vector.extract_strided_slice %0 {offsets = [1, 0], sizes = [1, 256], strides = [1, 1]} : vector<8x512xf32> to vector<1x256xf32>
    %3 = vector.extract_strided_slice %0 {offsets = [2, 0], sizes = [1, 256], strides = [1, 1]} : vector<8x512xf32> to vector<1x256xf32>
    %4 = vector.extract_strided_slice %0 {offsets = [3, 0], sizes = [1, 256], strides = [1, 1]} : vector<8x512xf32> to vector<1x256xf32>
    %5 = vector.extract_strided_slice %0 {offsets = [4, 0], sizes = [1, 128], strides = [1, 1]} : vector<8x512xf32> to vector<1x128xf32>
    %6 = vector.extract_strided_slice %0 {offsets = [5, 0], sizes = [1, 1], strides = [1, 1]} : vector<8x512xf32> to vector<1x1xf32>
    %7 = vector.extract_strided_slice %0 {offsets = [6, 0], sizes = [1, 256], strides = [1, 1]} : vector<8x512xf32> to vector<1x256xf32>
    %c0_1 = arith.constant 0 : index
    %c0_2 = arith.constant 0 : index
    %8 = vector.load %arg1[%c0_1, %c0_2] : memref<8x32xf32, #tpu.memory_space<vmem>>, vector<8x32xf32>
    %9 = arith.truncf %8 : vector<8x32xf32> to vector<8x32xbf16>
    %c0_3 = arith.constant 0 : index
    %c0_4 = arith.constant 0 : index
    %10 = vector.load %arg2[%c0_3, %c0_4] : memref<32x256xbf16, #tpu.memory_space<vmem>>, vector<32x256xbf16>
    %cst = arith.constant dense<0.000000e+00> : vector<8x256xf32>
    %11 = tpu.matmul %9, %10, %cst {dimension_numbers = #tpu.dot_dimension_numbers<[1], [0], [0], [1], [0, 0, 1, 1], [], []>} : vector<8x32xbf16>, vector<32x256xbf16>, vector<8x256xf32> -> vector<8x256xf32>
    %12 = vector.broadcast %2 : vector<1x256xf32> to vector<8x256xf32>
    %13 = arith.addf %11, %12 : vector<8x256xf32>
    %cst_5 = arith.constant 0.000000e+00 : f32
    %14 = vector.broadcast %cst_5 : f32 to vector<8x256xf32>
    %15 = arith.maximumf %13, %14 : vector<8x256xf32>
    %16 = arith.truncf %15 : vector<8x256xf32> to vector<8x256xbf16>
    %c0_6 = arith.constant 0 : index
    %c0_7 = arith.constant 0 : index
    %17 = vector.load %arg3[%c0_6, %c0_7] : memref<256x512xbf16, #tpu.memory_space<vmem>>, vector<256x512xbf16>
    %cst_8 = arith.constant dense<0.000000e+00> : vector<8x512xf32>
    %18 = tpu.matmul %16, %17, %cst_8 {dimension_numbers = #tpu.dot_dimension_numbers<[1], [0], [0], [1], [0, 0, 1, 1], [], []>} : vector<8x256xbf16>, vector<256x512xbf16>, vector<8x512xf32> -> vector<8x512xf32>
    %19 = vector.broadcast %1 : vector<1x512xf32> to vector<8x512xf32>
    %20 = arith.addf %18, %19 : vector<8x512xf32>
    %cst_9 = arith.constant 0.000000e+00 : f32
    %21 = vector.broadcast %cst_9 : f32 to vector<8x512xf32>
    %22 = arith.maximumf %20, %21 : vector<8x512xf32>
    %23 = vector.extract_strided_slice %22 {offsets = [0, 0], sizes = [8, 256], strides = [1, 1]} : vector<8x512xf32> to vector<8x256xf32>
    %24 = vector.extract_strided_slice %22 {offsets = [0, 256], sizes = [8, 256], strides = [1, 1]} : vector<8x512xf32> to vector<8x256xf32>
    %25 = arith.truncf %23 : vector<8x256xf32> to vector<8x256xbf16>
    %c0_10 = arith.constant 0 : index
    %c0_11 = arith.constant 0 : index
    %26 = vector.load %arg4[%c0_10, %c0_11] : memref<256x256xbf16, #tpu.memory_space<vmem>>, vector<256x256xbf16>
    %cst_12 = arith.constant dense<0.000000e+00> : vector<8x256xf32>
    %27 = tpu.matmul %25, %26, %cst_12 {dimension_numbers = #tpu.dot_dimension_numbers<[1], [0], [0], [1], [0, 0, 1, 1], [], []>} : vector<8x256xbf16>, vector<256x256xbf16>, vector<8x256xf32> -> vector<8x256xf32>
    %28 = vector.broadcast %3 : vector<1x256xf32> to vector<8x256xf32>
    %29 = arith.addf %27, %28 : vector<8x256xf32>
    %cst_13 = arith.constant 0.000000e+00 : f32
    %30 = vector.broadcast %cst_13 : f32 to vector<8x256xf32>
    %31 = arith.maximumf %29, %30 : vector<8x256xf32>
    %32 = arith.truncf %24 : vector<8x256xf32> to vector<8x256xbf16>
    %c0_14 = arith.constant 0 : index
    %c0_15 = arith.constant 0 : index
    %33 = vector.load %arg5[%c0_14, %c0_15] : memref<256x256xbf16, #tpu.memory_space<vmem>>, vector<256x256xbf16>
    %cst_16 = arith.constant dense<0.000000e+00> : vector<8x256xf32>
    %34 = tpu.matmul %32, %33, %cst_16 {dimension_numbers = #tpu.dot_dimension_numbers<[1], [0], [0], [1], [0, 0, 1, 1], [], []>} : vector<8x256xbf16>, vector<256x256xbf16>, vector<8x256xf32> -> vector<8x256xf32>
    %35 = vector.broadcast %4 : vector<1x256xf32> to vector<8x256xf32>
    %36 = arith.addf %34, %35 : vector<8x256xf32>
    %cst_17 = arith.constant 0.000000e+00 : f32
    %37 = vector.broadcast %cst_17 : f32 to vector<8x256xf32>
    %38 = arith.maximumf %36, %37 : vector<8x256xf32>
    %39 = arith.truncf %31 : vector<8x256xf32> to vector<8x256xbf16>
    %c0_18 = arith.constant 0 : index
    %c0_19 = arith.constant 0 : index
    %40 = vector.load %arg6[%c0_18, %c0_19] : memref<256x128xbf16, #tpu.memory_space<vmem>>, vector<256x128xbf16>
    %cst_20 = arith.constant dense<0.000000e+00> : vector<8x128xf32>
    %41 = tpu.matmul %39, %40, %cst_20 {dimension_numbers = #tpu.dot_dimension_numbers<[1], [0], [0], [1], [0, 0, 1, 1], [], []>} : vector<8x256xbf16>, vector<256x128xbf16>, vector<8x128xf32> -> vector<8x128xf32>
    %42 = vector.broadcast %5 : vector<1x128xf32> to vector<8x128xf32>
    %43 = arith.addf %41, %42 : vector<8x128xf32>
    %44 = vector.broadcast %7 : vector<1x256xf32> to vector<8x256xf32>
    %45 = arith.mulf %38, %44 : vector<8x256xf32>
    %cst_21 = arith.constant dense<0.000000e+00> : vector<8xf32>
    %46 = vector.multi_reduction <add>, %45, %cst_21 [1] : vector<8x256xf32> to vector<8xf32>
    %47 = vector.shape_cast %46 : vector<8xf32> to vector<8x1xf32>
    %48 = vector.broadcast %6 : vector<1x1xf32> to vector<8x1xf32>
    %49 = arith.addf %47, %48 : vector<8x1xf32>
    %50 = vector.extract_strided_slice %43 {offsets = [0, 0], sizes = [8, 8], strides = [1, 1]} : vector<8x128xf32> to vector<8x8xf32>
    %51 = vector.broadcast %49 : vector<8x1xf32> to vector<8x8xf32>
    %52 = arith.addf %51, %50 : vector<8x8xf32>
    %c0_22 = arith.constant 0 : index
    %c0_23 = arith.constant 0 : index
    %53 = vector.load %arg8[%c0_22, %c0_23] : memref<8x8xf32, #tpu.memory_space<vmem>>, vector<8x8xf32>
    tpu.vector_store %arg8[%c0_22, %c0_23], %52 {strides = array<i32>} : memref<8x8xf32, #tpu.memory_space<vmem>>, vector<8x8xf32>,
    %c8_i32 = arith.constant 8 : i32
    %54 = arith.muli %arg0, %c8_i32 : i32
    %55 = tpu.iota {dimensions = array<i32: 0>} : vector<8x1xi32>
    %56 = vector.broadcast %54 : i32 to vector<8x1xi32>
    %57 = arith.addi %56, %55 : vector<8x1xi32>
    %c2_i32 = arith.constant 2 : i32
    %58 = vector.broadcast %c2_i32 : i32 to vector<8x1xi32>
    %59 = arith.cmpi slt, %57, %58 : vector<8x1xi32>
    %cst_24 = arith.constant 0.000000e+00 : f32
    %60 = vector.shape_cast %59 : vector<8x1xi1> to vector<8x1xi1>
    %61 = vector.broadcast %60 : vector<8x1xi1> to vector<8x128xi1>
    %62 = vector.broadcast %cst_24 : f32 to vector<8x128xf32>
    %63 = arith.select %61, %43, %62 : vector<8x128xi1>, vector<8x128xf32>
    %cst_25 = arith.constant dense<0.000000e+00> : vector<128xf32>
    %64 = vector.multi_reduction <add>, %63, %cst_25 [0] : vector<8x128xf32> to vector<128xf32>
    %65 = vector.shape_cast %64 : vector<128xf32> to vector<1x128xf32>
    %66 = vector.shape_cast %65 : vector<1x128xf32> to vector<1x1x128xf32>
    %c0_26 = arith.constant 0 : index
    %c0_27 = arith.constant 0 : index
    %c0_28 = arith.constant 0 : index
    %67 = vector.load %arg9[%c0_26, %c0_27, %c0_28] : memref<1x1x128xf32, #tpu.memory_space<vmem>>, vector<1x1x128xf32>
    tpu.vector_store %arg9[%c0_26, %c0_27, %c0_28], %66 {strides = array<i32>} : memref<1x1x128xf32, #tpu.memory_space<vmem>>, vector<1x1x128xf32>,
    return
  }
  func.func @transform_0(%arg0: i32) -> (i32, i32) {
    %c0_i32 = arith.constant 0 : i32
    %c0_i32_0 = arith.constant 0 : i32
    return %arg0, %c0_i32 : i32, i32
  }
  func.func @transform_1(%arg0: i32) -> (i32, i32) {
    %c0_i32 = arith.constant 0 : i32
    %c0_i32_0 = arith.constant 0 : i32
    %c0_i32_1 = arith.constant 0 : i32
    return %c0_i32, %c0_i32_0 : i32, i32
  }
  func.func @transform_2(%arg0: i32) -> (i32, i32) {
    %c0_i32 = arith.constant 0 : i32
    %c0_i32_0 = arith.constant 0 : i32
    %c0_i32_1 = arith.constant 0 : i32
    return %c0_i32, %c0_i32_0 : i32, i32
  }
  func.func @transform_3(%arg0: i32) -> (i32, i32) {
    %c0_i32 = arith.constant 0 : i32
    %c0_i32_0 = arith.constant 0 : i32
    %c0_i32_1 = arith.constant 0 : i32
    return %c0_i32, %c0_i32_0 : i32, i32
  }
  func.func @transform_4(%arg0: i32) -> (i32, i32) {
    %c0_i32 = arith.constant 0 : i32
    %c0_i32_0 = arith.constant 0 : i32
    %c0_i32_1 = arith.constant 0 : i32
    return %c0_i32, %c0_i32_0 : i32, i32
  }
  func.func @transform_5(%arg0: i32) -> (i32, i32) {
    %c0_i32 = arith.constant 0 : i32
    %c0_i32_0 = arith.constant 0 : i32
    %c0_i32_1 = arith.constant 0 : i32
    return %c0_i32, %c0_i32_0 : i32, i32
  }
  func.func @transform_6(%arg0: i32) -> (i32, i32) {
    %c0_i32 = arith.constant 0 : i32
    %c0_i32_0 = arith.constant 0 : i32
    %c0_i32_1 = arith.constant 0 : i32
    return %c0_i32, %c0_i32_0 : i32, i32
  }
  func.func @transform_7(%arg0: i32) -> (i32, i32) {
    %c0_i32 = arith.constant 0 : i32
    %c0_i32_0 = arith.constant 0 : i32
    return %arg0, %c0_i32 : i32, i32
  }
  func.func @transform_8(%arg0: i32) -> (i32, i32, i32) {
    %c0_i32 = arith.constant 0 : i32
    %c0_i32_0 = arith.constant 0 : i32
    %c0_i32_1 = arith.constant 0 : i32
    return %arg0, %c0_i32, %c0_i32_0 : i32, i32, i32
  }
}

module attributes {stable_mosaic.version = 11 : i64} {
  func.func @dueldqn_kernel(%arg0: i32, %arg1: memref<8x32xf32, #tpu.memory_space<vmem>>, %arg2: memref<32x256xbf16, #tpu.memory_space<vmem>>, %arg3: memref<256x512xbf16, #tpu.memory_space<vmem>>, %arg4: memref<256x256xbf16, #tpu.memory_space<vmem>>, %arg5: memref<256x256xbf16, #tpu.memory_space<vmem>>, %arg6: memref<256x128xbf16, #tpu.memory_space<vmem>>, %arg7: memref<8x512xf32, #tpu.memory_space<vmem>>, %arg8: memref<8x8xf32, #tpu.memory_space<vmem>>, %arg9: memref<1x1x128xf32, #tpu.memory_space<vmem>>) attributes {dimension_semantics = [#tpu.dimension_semantics<parallel>], iteration_bounds = array<i64: 1>, scalar_prefetch = 0 : i64, scratch_operands = 0 : i64, tpu.core_type = #tpu.core_type<tc>, window_params = [{transform_indices = @transform_0, window_bounds = array<i64: 8, 32>}, {pipeline_mode = #tpu.pipeline_mode<synchronous>, transform_indices = @transform_1, window_bounds = array<i64: 32, 256>}, {pipeline_mode = #tpu.pipeline_mode<synchronous>, transform_indices = @transform_2, window_bounds = array<i64: 256, 512>}, {pipeline_mode = #tpu.pipeline_mode<synchronous>, transform_indices = @transform_3, window_bounds = array<i64: 256, 256>}, {pipeline_mode = #tpu.pipeline_mode<synchronous>, transform_indices = @transform_4, window_bounds = array<i64: 256, 256>}, {pipeline_mode = #tpu.pipeline_mode<synchronous>, transform_indices = @transform_5, window_bounds = array<i64: 256, 128>}, {pipeline_mode = #tpu.pipeline_mode<synchronous>, transform_indices = @transform_6, window_bounds = array<i64: 8, 512>}, {transform_indices = @transform_7, window_bounds = array<i64: 8, 8>}, {transform_indices = @transform_8, window_bounds = array<i64: 1, 1, 128>}]} {
    %c0 = arith.constant 0 : index
    %c0_0 = arith.constant 0 : index
    %0 = vector.load %arg7[%c0, %c0_0] : memref<8x512xf32, #tpu.memory_space<vmem>>, vector<8x512xf32>
    %1 = vector.extract_strided_slice %0 {offsets = [0, 0], sizes = [1, 512], strides = [1, 1]} : vector<8x512xf32> to vector<1x512xf32>
    %2 = vector.extract_strided_slice %0 {offsets = [1, 0], sizes = [1, 256], strides = [1, 1]} : vector<8x512xf32> to vector<1x256xf32>
    %3 = vector.extract_strided_slice %0 {offsets = [2, 0], sizes = [1, 256], strides = [1, 1]} : vector<8x512xf32> to vector<1x256xf32>
    %4 = vector.extract_strided_slice %0 {offsets = [3, 0], sizes = [1, 256], strides = [1, 1]} : vector<8x512xf32> to vector<1x256xf32>
    %5 = vector.extract_strided_slice %0 {offsets = [4, 0], sizes = [1, 128], strides = [1, 1]} : vector<8x512xf32> to vector<1x128xf32>
    %6 = vector.extract_strided_slice %0 {offsets = [5, 0], sizes = [1, 1], strides = [1, 1]} : vector<8x512xf32> to vector<1x1xf32>
    %7 = vector.extract_strided_slice %0 {offsets = [6, 0], sizes = [1, 256], strides = [1, 1]} : vector<8x512xf32> to vector<1x256xf32>
    %c0_1 = arith.constant 0 : index
    %c0_2 = arith.constant 0 : index
    %8 = vector.load %arg1[%c0_1, %c0_2] : memref<8x32xf32, #tpu.memory_space<vmem>>, vector<8x32xf32>
    %9 = arith.truncf %8 : vector<8x32xf32> to vector<8x32xbf16>
    %c0_3 = arith.constant 0 : index
    %c0_4 = arith.constant 0 : index
    %10 = vector.load %arg2[%c0_3, %c0_4] : memref<32x256xbf16, #tpu.memory_space<vmem>>, vector<32x256xbf16>
    %cst = arith.constant dense<0.000000e+00> : vector<8x256xf32>
    %11 = tpu.matmul %9, %10, %cst {dimension_numbers = #tpu.dot_dimension_numbers<[1], [0], [0], [1], [0, 0, 1, 1], [], []>} : vector<8x32xbf16>, vector<32x256xbf16>, vector<8x256xf32> -> vector<8x256xf32>
    %12 = vector.broadcast %2 : vector<1x256xf32> to vector<8x256xf32>
    %13 = arith.addf %11, %12 : vector<8x256xf32>
    %cst_5 = arith.constant 0.000000e+00 : f32
    %14 = vector.broadcast %cst_5 : f32 to vector<8x256xf32>
    %15 = arith.maximumf %13, %14 : vector<8x256xf32>
    %16 = arith.truncf %15 : vector<8x256xf32> to vector<8x256xbf16>
    %c0_6 = arith.constant 0 : index
    %c0_7 = arith.constant 0 : index
    %17 = vector.load %arg3[%c0_6, %c0_7] : memref<256x512xbf16, #tpu.memory_space<vmem>>, vector<256x512xbf16>
    %cst_8 = arith.constant dense<0.000000e+00> : vector<8x512xf32>
    %18 = tpu.matmul %16, %17, %cst_8 {dimension_numbers = #tpu.dot_dimension_numbers<[1], [0], [0], [1], [0, 0, 1, 1], [], []>} : vector<8x256xbf16>, vector<256x512xbf16>, vector<8x512xf32> -> vector<8x512xf32>
    %19 = vector.broadcast %1 : vector<1x512xf32> to vector<8x512xf32>
    %20 = arith.addf %18, %19 : vector<8x512xf32>
    %cst_9 = arith.constant 0.000000e+00 : f32
    %21 = vector.broadcast %cst_9 : f32 to vector<8x512xf32>
    %22 = arith.maximumf %20, %21 : vector<8x512xf32>
    %23 = vector.extract_strided_slice %22 {offsets = [0, 0], sizes = [8, 256], strides = [1, 1]} : vector<8x512xf32> to vector<8x256xf32>
    %24 = vector.extract_strided_slice %22 {offsets = [0, 256], sizes = [8, 256], strides = [1, 1]} : vector<8x512xf32> to vector<8x256xf32>
    %25 = arith.truncf %23 : vector<8x256xf32> to vector<8x256xbf16>
    %c0_10 = arith.constant 0 : index
    %c0_11 = arith.constant 0 : index
    %26 = vector.load %arg4[%c0_10, %c0_11] : memref<256x256xbf16, #tpu.memory_space<vmem>>, vector<256x256xbf16>
    %cst_12 = arith.constant dense<0.000000e+00> : vector<8x256xf32>
    %27 = tpu.matmul %25, %26, %cst_12 {dimension_numbers = #tpu.dot_dimension_numbers<[1], [0], [0], [1], [0, 0, 1, 1], [], []>} : vector<8x256xbf16>, vector<256x256xbf16>, vector<8x256xf32> -> vector<8x256xf32>
    %28 = vector.broadcast %3 : vector<1x256xf32> to vector<8x256xf32>
    %29 = arith.addf %27, %28 : vector<8x256xf32>
    %cst_13 = arith.constant 0.000000e+00 : f32
    %30 = vector.broadcast %cst_13 : f32 to vector<8x256xf32>
    %31 = arith.maximumf %29, %30 : vector<8x256xf32>
    %32 = arith.truncf %24 : vector<8x256xf32> to vector<8x256xbf16>
    %c0_14 = arith.constant 0 : index
    %c0_15 = arith.constant 0 : index
    %33 = vector.load %arg5[%c0_14, %c0_15] : memref<256x256xbf16, #tpu.memory_space<vmem>>, vector<256x256xbf16>
    %cst_16 = arith.constant dense<0.000000e+00> : vector<8x256xf32>
    %34 = tpu.matmul %32, %33, %cst_16 {dimension_numbers = #tpu.dot_dimension_numbers<[1], [0], [0], [1], [0, 0, 1, 1], [], []>} : vector<8x256xbf16>, vector<256x256xbf16>, vector<8x256xf32> -> vector<8x256xf32>
    %35 = vector.broadcast %4 : vector<1x256xf32> to vector<8x256xf32>
    %36 = arith.addf %34, %35 : vector<8x256xf32>
    %cst_17 = arith.constant 0.000000e+00 : f32
    %37 = vector.broadcast %cst_17 : f32 to vector<8x256xf32>
    %38 = arith.maximumf %36, %37 : vector<8x256xf32>
    %39 = arith.truncf %31 : vector<8x256xf32> to vector<8x256xbf16>
    %c0_18 = arith.constant 0 : index
    %c0_19 = arith.constant 0 : index
    %40 = vector.load %arg6[%c0_18, %c0_19] : memref<256x128xbf16, #tpu.memory_space<vmem>>, vector<256x128xbf16>
    %cst_20 = arith.constant dense<0.000000e+00> : vector<8x128xf32>
    %41 = tpu.matmul %39, %40, %cst_20 {dimension_numbers = #tpu.dot_dimension_numbers<[1], [0], [0], [1], [0, 0, 1, 1], [], []>} : vector<8x256xbf16>, vector<256x128xbf16>, vector<8x128xf32> -> vector<8x128xf32>
    %42 = vector.broadcast %5 : vector<1x128xf32> to vector<8x128xf32>
    %43 = arith.addf %41, %42 : vector<8x128xf32>
    %44 = vector.broadcast %7 : vector<1x256xf32> to vector<8x256xf32>
    %45 = arith.mulf %38, %44 : vector<8x256xf32>
    %cst_21 = arith.constant dense<0.000000e+00> : vector<8xf32>
    %46 = vector.multi_reduction <add>, %45, %cst_21 [1] : vector<8x256xf32> to vector<8xf32>
    %47 = vector.shape_cast %46 : vector<8xf32> to vector<8x1xf32>
    %48 = vector.broadcast %6 : vector<1x1xf32> to vector<8x1xf32>
    %49 = arith.addf %47, %48 : vector<8x1xf32>
    %50 = vector.extract_strided_slice %43 {offsets = [0, 0], sizes = [8, 8], strides = [1, 1]} : vector<8x128xf32> to vector<8x8xf32>
    %51 = vector.broadcast %49 : vector<8x1xf32> to vector<8x8xf32>
    %52 = arith.addf %51, %50 : vector<8x8xf32>
    %c0_22 = arith.constant 0 : index
    %c0_23 = arith.constant 0 : index
    %53 = vector.load %arg8[%c0_22, %c0_23] : memref<8x8xf32, #tpu.memory_space<vmem>>, vector<8x8xf32>
    tpu.vector_store %arg8[%c0_22, %c0_23], %52 {strides = array<i32>} : memref<8x8xf32, #tpu.memory_space<vmem>>, vector<8x8xf32>,
    %c8_i32 = arith.constant 8 : i32
    %54 = arith.muli %arg0, %c8_i32 : i32
    %55 = tpu.iota {dimensions = array<i32: 0>} : vector<8x1xi32>
    %56 = vector.broadcast %54 : i32 to vector<8x1xi32>
    %57 = arith.addi %56, %55 : vector<8x1xi32>
    %c2_i32 = arith.constant 2 : i32
    %58 = vector.broadcast %c2_i32 : i32 to vector<8x1xi32>
    %59 = arith.cmpi slt, %57, %58 : vector<8x1xi32>
    %cst_24 = arith.constant 0.000000e+00 : f32
    %60 = vector.shape_cast %59 : vector<8x1xi1> to vector<8x1xi1>
    %61 = vector.broadcast %60 : vector<8x1xi1> to vector<8x128xi1>
    %62 = vector.broadcast %cst_24 : f32 to vector<8x128xf32>
    %63 = arith.select %61, %43, %62 : vector<8x128xi1>, vector<8x128xf32>
    %cst_25 = arith.constant dense<0.000000e+00> : vector<128xf32>
    %64 = vector.multi_reduction <add>, %63, %cst_25 [0] : vector<8x128xf32> to vector<128xf32>
    %65 = vector.shape_cast %64 : vector<128xf32> to vector<1x128xf32>
    %66 = vector.shape_cast %65 : vector<1x128xf32> to vector<1x1x128xf32>
    %c0_26 = arith.constant 0 : index
    %c0_27 = arith.constant 0 : index
    %c0_28 = arith.constant 0 : index
    %67 = vector.load %arg9[%c0_26, %c0_27, %c0_28] : memref<1x1x128xf32, #tpu.memory_space<vmem>>, vector<1x1x128xf32>
    tpu.vector_store %arg9[%c0_26, %c0_27, %c0_28], %66 {strides = array<i32>} : memref<1x1x128xf32, #tpu.memory_space<vmem>>, vector<1x1x128xf32>,
    return
  }
  func.func @transform_0(%arg0: i32) -> (i32, i32) {
    %c0_i32 = arith.constant 0 : i32
    %c0_i32_0 = arith.constant 0 : i32
    return %arg0, %c0_i32 : i32, i32
  }
  func.func @transform_1(%arg0: i32) -> (i32, i32) {
    %c0_i32 = arith.constant 0 : i32
    %c0_i32_0 = arith.constant 0 : i32
    %c0_i32_1 = arith.constant 0 : i32
    return %c0_i32, %c0_i32_0 : i32, i32
  }
  func.func @transform_2(%arg0: i32) -> (i32, i32) {
    %c0_i32 = arith.constant 0 : i32
    %c0_i32_0 = arith.constant 0 : i32
    %c0_i32_1 = arith.constant 0 : i32
    return %c0_i32, %c0_i32_0 : i32, i32
  }
  func.func @transform_3(%arg0: i32) -> (i32, i32) {
    %c0_i32 = arith.constant 0 : i32
    %c0_i32_0 = arith.constant 0 : i32
    %c0_i32_1 = arith.constant 0 : i32
    return %c0_i32, %c0_i32_0 : i32, i32
  }
  func.func @transform_4(%arg0: i32) -> (i32, i32) {
    %c0_i32 = arith.constant 0 : i32
    %c0_i32_0 = arith.constant 0 : i32
    %c0_i32_1 = arith.constant 0 : i32
    return %c0_i32, %c0_i32_0 : i32, i32
  }
  func.func @transform_5(%arg0: i32) -> (i32, i32) {
    %c0_i32 = arith.constant 0 : i32
    %c0_i32_0 = arith.constant 0 : i32
    %c0_i32_1 = arith.constant 0 : i32
    return %c0_i32, %c0_i32_0 : i32, i32
  }
  func.func @transform_6(%arg0: i32) -> (i32, i32) {
    %c0_i32 = arith.constant 0 : i32
    %c0_i32_0 = arith.constant 0 : i32
    %c0_i32_1 = arith.constant 0 : i32
    return %c0_i32, %c0_i32_0 : i32, i32
  }
  func.func @transform_7(%arg0: i32) -> (i32, i32) {
    %c0_i32 = arith.constant 0 : i32
    %c0_i32_0 = arith.constant 0 : i32
    return %arg0, %c0_i32 : i32, i32
  }
  func.func @transform_8(%arg0: i32) -> (i32, i32, i32) {
    %c0_i32 = arith.constant 0 : i32
    %c0_i32_0 = arith.constant 0 : i32
    %c0_i32_1 = arith.constant 0 : i32
    return %arg0, %c0_i32, %c0_i32_0 : i32, i32, i32
  }
}

</mosaic_0001>

<bundles_post_ra>
// kernel: tpu_custom_call.1
= control target key start
LH: loop header
LB: loop body
LE: loop exit
PB: predicated region body
PF: predicated region fallthrough
CT: control target
= control target key end

     0   :  { %14 = vsyncpa [#allocation3], 0  ;;  %s2249_s0 = inlined_call_operand.hbm [shape: f32[8,32], index: 0, kind: input, shape index: {}]   ;;  %s2250_s1 = inlined_call_operand.hbm [shape: bf16[32,256], index: 1, kind: input, shape index: {}]   ;;  %s2251_s2 = inlined_call_operand.hbm [shape: bf16[256,512], index: 2, kind: input, shape index: {}]   ;;  %s2252_s3 = inlined_call_operand.hbm [shape: bf16[256,256], index: 3, kind: input, shape index: {}]   ;;  %s2253_s4 = inlined_call_operand.hbm [shape: bf16[256,256], index: 4, kind: input, shape index: {}]   ;;  %s2254_s5 = inlined_call_operand.hbm [shape: bf16[256,128], index: 5, kind: input, shape index: {}]   ;;  %s2255_s6 = inlined_call_operand.hbm [shape: f32[8,512], index: 6, kind: input, shape index: {}]   ;;  %s2256_s7 = inlined_call_operand.hbm [shape: f32[8,8], index: 7, kind: output, shape index: {0}]   ;;  %s2257_s8 = inlined_call_operand.hbm [shape: f32[1,1,128], index: 8, kind: output, shape index: {1}]  }
   0x1   :  { %15 = vsyncpa [#allocation6], 0 }
   0x2   :  { %16 = vsyncpa [#allocation9], 0 }
   0x3   :  { %17 = vsyncpa [#allocation12], 0 }
   0x4   :  { %18 = vsyncpa [#allocation4], 0 }
   0x5   :  { %19 = vsyncpa [#allocation16], 0  ;;  %s2045_s27 = smov [#allocation5]   ;;  %s1835_s9 = scalar_lea.hbm %s2250_s1, 512 }
   0x6   :  { %s35_s28 = sshll.u32 %s2045_s27, 4  ;;  %p1836_p0 = scmp.ne.s32.totalorder %s2250_s1, %s1835_s9  ;;  %s36_s28 = int_to_ptr.vmem [resolvable:$true] %s35_s28 }
   0x7   :  { %p1839_p1 = scmp.lt.u32.totalorder %s1835_s9, %s2250_s1 }
   0x9   :  { %p1841_p2 = pnand %p1839_p1, %p1836_p0 }
   0xb   :  { %1844 = shalt.err (!%p1841_p2)
}
   0xc   :  { %s1845_s14 = scalar_lea.vmem %s36_s28, 512  ;;  %p1850_p4 = scmp.lt.s32.totalorder %s36_s28, %s36_s28 }
   0xd   :  { %p1846_p3 = scmp.ne.s32.totalorder %s36_s28, %s1845_s14  ;;  %p1851_p5 = scmp.lt.s32.totalorder %s1845_s14, %s1845_s14 }
   0xf   :  { %p1852_p6 = por %p1851_p5, %p1850_p4 }
  0x11   :  { %p1853_p7 = pnand %p1852_p6, %p1846_p3 }
  0x13   :  { %1856 = shalt.err (!%p1853_p7)
}
  0x14   :  { %s2046_s15 = smov 128   ;;  %s2047_s16 = smov 8  }
  0x15   :  { %41 = dma.hbm_to_vmem [thread:$0]  %s2250_s1, 512, %s36_s28, [#allocation6], %s2046_s15, %s2046_s15, %s2047_s16  }
  0x16   :  { %s2048_s19 = smov [#allocation8]   ;;  %s2049_s21 = smov [#allocation11]  }
  0x17   :  { %s59_s20 = sshll.u32 %s2048_s19, 4  ;;  %s83_s22 = sshll.u32 %s2049_s21, 4  ;;  %s60_s20 = int_to_ptr.vmem [resolvable:$true] %s59_s20  ;;  %s84_s22 = int_to_ptr.vmem [resolvable:$true] %s83_s22 }
  0x18   :  { %s1857_s25 = scalar_lea.hbm %s2252_s3, 4096 }
  0x19   :  { %p1858_p8 = scmp.ne.s32.totalorder %s2252_s3, %s1857_s25  ;;  %p1861_p9 = scmp.lt.u32.totalorder %s1857_s25, %s2252_s3 }
  0x1b   :  { %p1863_p10 = pnand %p1861_p9, %p1858_p8 }
  0x1d   :  { %1866 = shalt.err (!%p1863_p10)
}
  0x1e   :  { %s1867_s1 = scalar_lea.vmem %s60_s20, 4096  ;;  %p1872_p12 = scmp.lt.s32.totalorder %s60_s20, %s60_s20 }
  0x1f   :  { %p1868_p11 = scmp.ne.s32.totalorder %s60_s20, %s1867_s1  ;;  %p1873_p13 = scmp.lt.s32.totalorder %s1867_s1, %s1867_s1 }
  0x21   :  { %p1874_p0 = por %p1873_p13, %p1872_p12 }
  0x23   :  { %p1875_p1 = pnand %p1874_p0, %p1868_p11 }
  0x25   :  { %1878 = shalt.err (!%p1875_p1)
}
  0x26   :  { %65 = dma.hbm_to_vmem [thread:$0]  %s2252_s3, 4096, %s60_s20, [#allocation9], %s2046_s15, %s2046_s15, %s2047_s16  }
  0x27   :  { %s1879_s12 = scalar_lea.hbm %s2254_s5, 2048 }
  0x28   :  { %p1880_p2 = scmp.ne.s32.totalorder %s2254_s5, %s1879_s12  ;;  %p1883_p3 = scmp.lt.u32.totalorder %s1879_s12, %s2254_s5 }
  0x2a   :  { %p1885_p4 = pnand %p1883_p3, %p1880_p2 }
  0x2c   :  { %1888 = shalt.err (!%p1885_p4)
}
  0x2d   :  { %s1889_s19 = scalar_lea.vmem %s84_s22, 2048  ;;  %p1894_p6 = scmp.lt.s32.totalorder %s84_s22, %s84_s22 }
  0x2e   :  { %p1890_p5 = scmp.ne.s32.totalorder %s84_s22, %s1889_s19  ;;  %p1895_p7 = scmp.lt.s32.totalorder %s1889_s19, %s1889_s19 }
  0x30   :  { %p1896_p8 = por %p1895_p7, %p1894_p6 }
  0x32   :  { %p1897_p9 = pnand %p1896_p8, %p1890_p5 }
  0x34   :  { %1900 = shalt.err (!%p1897_p9)
}
  0x35   :  { %s2050_s3 = smov 64   ;;  %s2051_s20 = smov 4  }
  0x36   :  { %89 = dma.hbm_to_vmem [thread:$0]  %s2254_s5, 2048, %s84_s22, [#allocation12], %s2050_s3, %s2050_s3, %s2051_s20  }
  0x37   :  { %s2052_s24 = smov [#allocation2]   ;;  %s2053_s26 = smov [#allocation7]  }
  0x38   :  { %s26_s25 = sshll.u32 %s2052_s24, 4  ;;  %s47_s27 = sshll.u32 %s2053_s26, 4  ;;  %s27_s25 = int_to_ptr.vmem [resolvable:$true] %s26_s25  ;;  %s48_s27 = int_to_ptr.vmem [resolvable:$true] %s47_s27 }
  0x39   :  { %s1901_s1 = scalar_lea.hbm %s2249_s0, 128 }
  0x3a   :  { %p1902_p10 = scmp.ne.s32.totalorder %s2249_s0, %s1901_s1  ;;  %p1905_p11 = scmp.lt.u32.totalorder %s1901_s1, %s2249_s0 }
  0x3c   :  { %p1907_p12 = pnand %p1905_p11, %p1902_p10 }
  0x3e   :  { %1910 = shalt.err (!%p1907_p12)
}
  0x3f   :  { %s1911_s5 = scalar_lea.vmem %s27_s25, 128  ;;  %p1916_p0 = scmp.lt.s32.totalorder %s27_s25, %s27_s25 }
  0x40   :  { %p1912_p13 = scmp.ne.s32.totalorder %s27_s25, %s1911_s5  ;;  %p1917_p1 = scmp.lt.s32.totalorder %s1911_s5, %s1911_s5 }
  0x42   :  { %p1918_p2 = por %p1917_p1, %p1916_p0 }
  0x44   :  { %p1919_p3 = pnand %p1918_p2, %p1912_p13 }
  0x46   :  { %1922 = shalt.err (!%p1919_p3)
}
  0x47   :  { %29 = dma.hbm_to_vmem [thread:$0]  %s2249_s0, 128, %s27_s25, [#allocation3]  }
  0x48   :  { %s1923_s17 = scalar_lea.hbm %s2251_s2, 8192 }
  0x49   :  { %p1924_p4 = scmp.ne.s32.totalorder %s2251_s2, %s1923_s17  ;;  %p1927_p5 = scmp.lt.u32.totalorder %s1923_s17, %s2251_s2 }
  0x4b   :  { %p1929_p6 = pnand %p1927_p5, %p1924_p4 }
  0x4d   :  { %1932 = shalt.err (!%p1929_p6)
}
  0x4e   :  { %s1933_s21 = scalar_lea.vmem %s48_s27, 8192  ;;  %p1938_p8 = scmp.lt.s32.totalorder %s48_s27, %s48_s27 }
  0x4f   :  { %p1934_p7 = scmp.ne.s32.totalorder %s48_s27, %s1933_s21  ;;  %p1939_p9 = scmp.lt.s32.totalorder %s1933_s21, %s1933_s21 }
  0x51   :  { %p1940_p10 = por %p1939_p9, %p1938_p8 }
  0x53   :  { %p1941_p11 = pnand %p1940_p10, %p1934_p7 }
  0x55   :  { %1944 = shalt.err (!%p1941_p11)
}
  0x56   :  { %s2054_s0 = smov 256   ;;  %s2055_s23 = smov 16  }
  0x57   :  { %53 = dma.hbm_to_vmem [thread:$0]  %s2251_s2, 8192, %s48_s27, [#allocation6], %s2054_s0, %s2054_s0, %s2055_s23  }
  0x58   :  { %s2056_s26 = smov [#allocation10]   ;;  %s2057_s30 = smov [#allocation13]  }
  0x59   :  { %s71_s29 = sshll.u32 %s2056_s26, 4  ;;  %s96_s1 = sshll.u32 %s2057_s30, 4  ;;  %s72_s29 = int_to_ptr.vmem [resolvable:$true] %s71_s29  ;;  %s97_s1 = int_to_ptr.vmem [resolvable:$true] %s96_s1 }
  0x5a   :  { %s1945_s10 = scalar_lea.hbm %s2253_s4, 4096 }
  0x5b   :  { %p1946_p12 = scmp.ne.s32.totalorder %s2253_s4, %s1945_s10  ;;  %p1949_p13 = scmp.lt.u32.totalorder %s1945_s10, %s2253_s4 }
  0x5d   :  { %p1951_p0 = pnand %p1949_p13, %p1946_p12 }
  0x5f   :  { %1954 = shalt.err (!%p1951_p0)
}
  0x60   :  { %s1955_s2 = scalar_lea.vmem %s72_s29, 4096  ;;  %p1960_p2 = scmp.lt.s32.totalorder %s72_s29, %s72_s29 }
  0x61   :  { %p1956_p1 = scmp.ne.s32.totalorder %s72_s29, %s1955_s2  ;;  %p1961_p3 = scmp.lt.s32.totalorder %s1955_s2, %s1955_s2 }
  0x63   :  { %p1962_p4 = por %p1961_p3, %p1960_p2 }
  0x65   :  { %p1963_p5 = pnand %p1962_p4, %p1956_p1 }
  0x67   :  { %1966 = shalt.err (!%p1963_p5)
}
  0x68   :  { %77 = dma.hbm_to_vmem [thread:$0]  %s2253_s4, 4096, %s72_s29, [#allocation9], %s2046_s15, %s2046_s15, %s2047_s16  }
  0x69   :  { %s1967_s18 = scalar_lea.hbm %s2255_s6, 512 }
  0x6a   :  { %p1968_p6 = scmp.ne.s32.totalorder %s2255_s6, %s1967_s18  ;;  %p1971_p7 = scmp.lt.u32.totalorder %s1967_s18, %s2255_s6 }
  0x6c   :  { %p1973_p8 = pnand %p1971_p7, %p1968_p6 }
  0x6e   :  { %1976 = shalt.err (!%p1973_p8)
}
  0x6f   :  { %s1977_s0 = scalar_lea.vmem %s97_s1, 512  ;;  %p1982_p10 = scmp.lt.s32.totalorder %s97_s1, %s97_s1 }
  0x70   :  { %p1978_p9 = scmp.ne.s32.totalorder %s97_s1, %s1977_s0  ;;  %p1983_p11 = scmp.lt.s32.totalorder %s1977_s0, %s1977_s0 }
  0x72   :  { %p1984_p12 = por %p1983_p11, %p1982_p10 }
  0x74   :  { %p1985_p13 = pnand %p1984_p12, %p1978_p9 }
  0x76   :  { %1988 = shalt.err (!%p1985_p13)
}
  0x77   :  { %99 = dma.hbm_to_vmem [thread:$0]  %s2255_s6, 512, %s97_s1, [#allocation12]  }
  0x78   :  { %2033 = dma.done.wait [#allocation3], 128  }
  0x79   :  { %2034 = vsyncadd [#allocation3], 4294967168 }
  0x7a   :  { %2035 = dma.done.wait [#allocation6], 8704  }
  0x7b   :  { %2036 = vsyncadd [#allocation6], 4294958592 }
  0x7c   :  { %2037 = dma.done.wait [#allocation9], 8192  }
  0x7d   :  { %2038 = vsyncadd [#allocation9], 4294959104 }
  0x7e   :  { %2039 = dma.done.wait [#allocation12], 2560  }
  0x7f   :  { %2040 = vsyncadd [#allocation12], 4294964736  ;;  %v2058_v0 = vmov 0   ;;  %v1621_v1 = vld [vmem:[#allocation5 + $0x4] ss:$8 sps:$4 sm:$0xff]   ;;  %v126_v5 = vld [vmem:[#allocation2] sm:$0xff] }
  0x80   :  { %196 = vmatprep.mubr.bf16.mxu0 %v2058_v0  ;;  %1620 = vset.pattern.permute.xlu0 %v2058_v0  ;;  %v1623_v2 = vld [vmem:[#allocation5] ss:$8 sps:$4 sm:$0xff]   ;;  %v1624_v3 = vld [vmem:[#allocation5 + $0x14] ss:$8 sps:$4 sm:$0xff]   ;;  %v1626_v4 = vld [vmem:[#allocation5 + $0x10] ss:$8 sps:$4 sm:$0xff]   ;;  %v127_v9 = vpack.c.bf16 %v126_v5, %v126_v5 }
  0x81   :  { %164 = vmatprep.subr.bf16.mxu0 %v1621_v1  ;;  %v1627_v6 = vld [vmem:[#allocation7 + $0x4] ss:$16 sps:$4 sm:$0xff]   ;;  %v1631_v7 = vld [vmem:[#allocation7 + $0xc] ss:$16 sps:$4 sm:$0xff]   ;;  %v1632_v8 = vld [vmem:[#allocation7] ss:$16 sps:$4 sm:$0xff]  }
  0x82   :  { %165 = vmatpush1.bf16.msra.mxu0 %v1623_v2  ;;  %609 = vmatprep.subr.bf16.mxu1 %v1627_v6  ;;  %v1633_v10 = vld [vmem:[#allocation7 + $0x24] ss:$16 sps:$4 sm:$0xff]   ;;  %vm160_vm0 = vcmask 261120   ;;  %v1629_v11 = vld [vmem:[#allocation7 + $0x8] ss:$16 sps:$4 sm:$0xff]   ;;  %s2059_s6 = smov [#allocation15]  }
  0x83   :  { %166 = vmatprep.subr.bf16.mxu0 %v1624_v3  ;;  %610 = vmatpush1.bf16.msra.mxu1 %v1632_v8  ;;  %v1637_v12 = vld [vmem:[#allocation7 + $0x2c] ss:$16 sps:$4 sm:$0xff]   ;;  %v1638_v13 = vld [vmem:[#allocation7 + $0x20] ss:$16 sps:$4 sm:$0xff]   ;;  %v1639_v14 = vld [vmem:[#allocation7 + $0x44] ss:$16 sps:$4 sm:$0xff]  }
  0x84   :  { %611 = vmatprep.subr.bf16.mxu1 %v1633_v10  ;;  %v1635_v15 = vld [vmem:[#allocation7 + $0x28] ss:$16 sps:$4 sm:$0xff]   ;;  %v1643_v16 = vld [vmem:[#allocation7 + $0x4c] ss:$16 sps:$4 sm:$0xff]   ;;  %v1644_v17 = vld [vmem:[#allocation7 + $0x40] ss:$16 sps:$4 sm:$0xff]  }
  0x85   :  { %v1645_v18 = vld [vmem:[#allocation7 + $0x64] ss:$16 sps:$4 sm:$0xff]   ;;  %v1641_v19 = vld [vmem:[#allocation7 + $0x48] ss:$16 sps:$4 sm:$0xff]   ;;  %v1649_v20 = vld [vmem:[#allocation7 + $0x6c] ss:$16 sps:$4 sm:$0xff]  }
  0x86   :  { %167 = vmatpush1.bf16.msra.mxu0 %v1626_v4  ;;  %v1650_v21 = vld [vmem:[#allocation7 + $0x60] ss:$16 sps:$4 sm:$0xff]   ;;  %v1651_v22 = vld [vmem:[#allocation7 + $0x84] ss:$16 sps:$4 sm:$0xff]   ;;  %v1647_v23 = vld [vmem:[#allocation7 + $0x68] ss:$16 sps:$4 sm:$0xff]  }
  0x87   :  { %650 = vmatprep.subr.bf16.mxu0 %v1631_v7  ;;  %612 = vmatpush1.bf16.msra.mxu1 %v1638_v13  ;;  %v1655_v24 = vld [vmem:[#allocation7 + $0x8c] ss:$16 sps:$4 sm:$0xff]   ;;  %v1656_v25 = vld [vmem:[#allocation7 + $0x80] ss:$16 sps:$4 sm:$0xff]   ;;  %v1657_v26 = vld [vmem:[#allocation7 + $0xa4] ss:$16 sps:$4 sm:$0xff]  }
  0x88   :  { %613 = vmatprep.subr.bf16.mxu1 %v1639_v14  ;;  %v1653_v27 = vld [vmem:[#allocation7 + $0x88] ss:$16 sps:$4 sm:$0xff]   ;;  %v1661_v28 = vld [vmem:[#allocation7 + $0xac] ss:$16 sps:$4 sm:$0xff]   ;;  %v1662_v29 = vld [vmem:[#allocation7 + $0xa0] ss:$16 sps:$4 sm:$0xff]  }
  0x89   :  { %1437 = vmatmul.mubr.msk.bf16.vlgmr.msra.gmra.mrb[0].mxu0 %vm160_vm0, %v127_v9  ;;  %v1663_v30 = vld [vmem:[#allocation7 + $0xc4] ss:$16 sps:$4 sm:$0xff]   ;;  %v1659_v31 = vld [vmem:[#allocation7 + $0xa8] ss:$16 sps:$4 sm:$0xff]   ;;  %v1667_v32 = vld [vmem:[#allocation7 + $0xcc] ss:$16 sps:$4 sm:$0xff]   ;;  %v132_v9 = vlaneseq }
  0x8a   :  { %651 = vmatpush1.bf16.msra.mxu0 %v1629_v11  ;;  %v1668_v33 = vld [vmem:[#allocation7 + $0xc0] ss:$16 sps:$4 sm:$0xff]   ;;  %v1669_v34 = vld [vmem:[#allocation7 + $0xe4] ss:$16 sps:$4 sm:$0xff]   ;;  %v1665_v35 = vld [vmem:[#allocation7 + $0xc8] ss:$16 sps:$4 sm:$0xff]  }
  0x8b   :  { %652 = vmatprep.subr.bf16.mxu0 %v1637_v12  ;;  %614 = vmatpush1.bf16.msra.mxu1 %v1644_v17  ;;  %v1673_v36 = vld [vmem:[#allocation7 + $0xec] ss:$16 sps:$4 sm:$0xff]   ;;  %v1674_v37 = vld [vmem:[#allocation7 + $0xe0] ss:$16 sps:$4 sm:$0xff]   ;;  %v1675_v38 = vld [vmem:[#allocation7 + $0x104] ss:$16 sps:$4 sm:$0xff]  }
  0x8c   :  { %615 = vmatprep.subr.bf16.mxu1 %v1645_v18  ;;  %v1671_v39 = vld [vmem:[#allocation7 + $0xe8] ss:$16 sps:$4 sm:$0xff]   ;;  %v1679_v40 = vld [vmem:[#allocation7 + $0x10c] ss:$16 sps:$4 sm:$0xff]   ;;  %v1680_v41 = vld [vmem:[#allocation7 + $0x100] ss:$16 sps:$4 sm:$0xff]  }
  0x8d   :  { %v1681_v42 = vld [vmem:[#allocation7 + $0x124] ss:$16 sps:$4 sm:$0xff]   ;;  %v1677_v43 = vld [vmem:[#allocation7 + $0x108] ss:$16 sps:$4 sm:$0xff]   ;;  %v1686_v44 = vld [vmem:[#allocation7 + $0x120] ss:$16 sps:$4 sm:$0xff]  }
  0x8e   :  { %653 = vmatpush1.bf16.msra.mxu0 %v1635_v15  ;;  %v1685_v45 = vld [vmem:[#allocation7 + $0x12c] ss:$16 sps:$4 sm:$0xff]   ;;  %v1687_v46 = vld [vmem:[#allocation7 + $0x144] ss:$16 sps:$4 sm:$0xff]   ;;  %v1683_v47 = vld [vmem:[#allocation7 + $0x128] ss:$16 sps:$4 sm:$0xff]  }
  0x8f   :  { %654 = vmatprep.subr.bf16.mxu0 %v1643_v16  ;;  %616 = vmatpush1.bf16.msra.mxu1 %v1650_v21  ;;  %v1692_v48 = vld [vmem:[#allocation7 + $0x140] ss:$16 sps:$4 sm:$0xff]   ;;  %v1691_v49 = vld [vmem:[#allocation7 + $0x14c] ss:$16 sps:$4 sm:$0xff]   ;;  %v1693_v50 = vld [vmem:[#allocation7 + $0x164] ss:$16 sps:$4 sm:$0xff]  }
  0x90   :  { %617 = vmatprep.subr.bf16.mxu1 %v1651_v22  ;;  %v1689_v51 = vld [vmem:[#allocation7 + $0x148] ss:$16 sps:$4 sm:$0xff]   ;;  %v1698_v52 = vld [vmem:[#allocation7 + $0x160] ss:$16 sps:$4 sm:$0xff]   ;;  %v1697_v53 = vld [vmem:[#allocation7 + $0x16c] ss:$16 sps:$4 sm:$0xff]  }
  0x91   :  { %v1699_v54 = vld [vmem:[#allocation7 + $0x184] ss:$16 sps:$4 sm:$0xff]   ;;  %v1695_v55 = vld [vmem:[#allocation7 + $0x168] ss:$16 sps:$4 sm:$0xff]   ;;  %v1704_v56 = vld [vmem:[#allocation7 + $0x180] ss:$16 sps:$4 sm:$0xff]  }
  0x92   :  { %655 = vmatpush1.bf16.msra.mxu0 %v1641_v19  ;;  %v1703_v57 = vld [vmem:[#allocation7 + $0x18c] ss:$16 sps:$4 sm:$0xff]   ;;  %v1705_v58 = vld [vmem:[#allocation7 + $0x1a4] ss:$16 sps:$4 sm:$0xff]   ;;  %v1701_v59 = vld [vmem:[#allocation7 + $0x188] ss:$16 sps:$4 sm:$0xff]  }
  0x93   :  { %656 = vmatprep.subr.bf16.mxu0 %v1649_v20  ;;  %618 = vmatpush1.bf16.msra.mxu1 %v1656_v25  ;;  %v1710_v60 = vld [vmem:[#allocation7 + $0x1a0] ss:$16 sps:$4 sm:$0xff]   ;;  %v1709_v61 = vld [vmem:[#allocation7 + $0x1ac] ss:$16 sps:$4 sm:$0xff]   ;;  %v1707_v62 = vld [vmem:[#allocation7 + $0x1a8] ss:$16 sps:$4 sm:$0xff]  }
  0x94   :  { %619 = vmatprep.subr.bf16.mxu1 %v1657_v26  ;;  %v1711_v63 = vld [vmem:[#allocation7 + $0x1c4] ss:$16 sps:$4 sm:$0xff]   ;;  %v1715_v0 = vld [vmem:[#allocation7 + $0x1cc] ss:$16 sps:$4 sm:$0xff]   ;;  %v1713_v1 = vld [vmem:[#allocation7 + $0x1c8] ss:$16 sps:$4 sm:$0xff]  }
  0x95   :  { %v1716_v2 = vld [vmem:[#allocation7 + $0x1c0] ss:$16 sps:$4 sm:$0xff]   ;;  %v1717_v3 = vld [vmem:[#allocation7 + $0x1e4] ss:$16 sps:$4 sm:$0xff]   ;;  %v1721_v4 = vld [vmem:[#allocation7 + $0x1ec] ss:$16 sps:$4 sm:$0xff]  }
  0x96   :  { %657 = vmatpush1.bf16.msra.mxu0 %v1647_v23  ;;  %v1719_v5 = vld [vmem:[#allocation7 + $0x1e8] ss:$16 sps:$4 sm:$0xff]   ;;  %v1722_v6 = vld [vmem:[#allocation7 + $0x1e0] ss:$16 sps:$4 sm:$0xff]   ;;  %v1725_v7 = vld [vmem:[#allocation8 + $0x4] ss:$8 sps:$4 sm:$0xff]  }
  0x97   :  { %658 = vmatprep.subr.bf16.mxu0 %v1655_v24  ;;  %620 = vmatpush1.bf16.msra.mxu1 %v1662_v29  ;;  %v1728_v8 = vld [vmem:[#allocation10 + $0x4] ss:$8 sps:$4 sm:$0xff]   ;;  %v2199_v10 = vshrl.u32 %v132_v9, 7  ;;  %v1723_v25 = vld [vmem:[#allocation8] ss:$8 sps:$4 sm:$0xff]   ;;  %s1417_s16 = sshll.u32 %s2059_s6, 4  ;;  %s1418_s16 = int_to_ptr.vmem [resolvable:$true] %s1417_s16 }
  0x98   :  { %621 = vmatprep.subr.bf16.mxu1 %v1663_v30  ;;  %v2202_v12 = vld [vmem:[#allocation13] sm:$0xff]  ;;  %v2204_v13 = vld [vmem:[#allocation13 + $0x8] sm:$0xff]  ;;  %v1734_v29 = vld [vmem:[#allocation10 + $0x14] ss:$8 sps:$4 sm:$0xff]   ;;  %s1989_s23 = scalar_lea.vmem %s1418_s16, 16  ;;  %s1993_s24 = scalar_lea.vmem %s1418_s16, 32 }
  0x99   :  { %v134_v11 = vsub.s32 1, %v2199_v10  ;;  %v1726_v26 = vld [vmem:[#allocation10] ss:$8 sps:$4 sm:$0xff]   ;;  %v1729_v30 = vld [vmem:[#allocation8 + $0x10] ss:$8 sps:$4 sm:$0xff]   ;;  %vm1390_vm1 = vcmp.lt.s32.totalorder %v2199_v10, 2  ;;  %p1990_p0 = scmp.ne.s32.totalorder %s1418_s16, %s1989_s23  ;;  %p1994_p1 = scmp.lt.s32.totalorder %s1418_s16, %s1418_s16 }
  0x9a   :  { %659 = vmatpush1.bf16.msra.mxu0 %v1653_v27  ;;  %v1800_v9 = vld [vmem:[#allocation10 + $0xc4] ss:$8 sps:$4 sm:$0xff]   ;;  %p1995_p2 = scmp.lt.s32.totalorder %s1993_s24, %s1989_s23 }
  0x9b   :  { %660 = vmatprep.subr.bf16.mxu0 %v1661_v28  ;;  %622 = vmatpush1.bf16.msra.mxu1 %v1668_v33  ;;  %v135_v14 = vrot.slane %v2202_v12, %v134_v11  ;;  %v139_v15 = vrot.slane %v2204_v13, %v134_v11  ;;  %v1731_v28 = vld [vmem:[#allocation8 + $0x14] ss:$8 sps:$4 sm:$0xff]   ;;  %v1740_v33 = vld [vmem:[#allocation10 + $0x24] ss:$8 sps:$4 sm:$0xff]   ;;  %v1795_v11 = vld [vmem:[#allocation8 + $0xc0] ss:$8 sps:$4 sm:$0xff]  }
  0x9c   :  { %623 = vmatprep.subr.bf16.mxu1 %v1669_v34  ;;  %v1735_v34 = vld [vmem:[#allocation8 + $0x20] ss:$8 sps:$4 sm:$0xff]   ;;  %p1996_p3 = por %p1995_p2, %p1994_p1 }
  0x9e   :  { %661 = vmatpush1.bf16.msra.mxu0 %v1659_v31  ;;  %v1732_v31 = vld [vmem:[#allocation10 + $0x10] ss:$8 sps:$4 sm:$0xff]   ;;  %p1997_p4 = pnand %p1996_p3, %p1990_p0 }
  0x9f   :  { %662 = vmatprep.subr.bf16.mxu0 %v1667_v32  ;;  %624 = vmatpush1.bf16.msra.mxu1 %v1674_v37  ;;  %v1737_v32 = vld [vmem:[#allocation8 + $0x24] ss:$8 sps:$4 sm:$0xff]   ;;  %v1746_v37 = vld [vmem:[#allocation10 + $0x34] ss:$8 sps:$4 sm:$0xff]  }
  0xa0   :  { %625 = vmatprep.subr.bf16.mxu1 %v1675_v38  ;;  %v1741_v38 = vld [vmem:[#allocation8 + $0x30] ss:$8 sps:$4 sm:$0xff]  }
  0xa2   :  { %663 = vmatpush1.bf16.msra.mxu0 %v1665_v35  ;;  %v1738_v35 = vld [vmem:[#allocation10 + $0x20] ss:$8 sps:$4 sm:$0xff]  }
  0xa3   :  { %664 = vmatprep.subr.bf16.mxu0 %v1673_v36  ;;  %626 = vmatpush1.bf16.msra.mxu1 %v1680_v41  ;;  %v1743_v36 = vld [vmem:[#allocation8 + $0x34] ss:$8 sps:$4 sm:$0xff]   ;;  %v1752_v41 = vld [vmem:[#allocation10 + $0x44] ss:$8 sps:$4 sm:$0xff]  }
  0xa4   :  { %627 = vmatprep.subr.bf16.mxu1 %v1681_v42  ;;  %v1747_v42 = vld [vmem:[#allocation8 + $0x40] ss:$8 sps:$4 sm:$0xff]  }
  0xa6   :  { %665 = vmatpush1.bf16.msra.mxu0 %v1671_v39  ;;  %v1744_v39 = vld [vmem:[#allocation10 + $0x30] ss:$8 sps:$4 sm:$0xff]  }
  0xa7   :  { %666 = vmatprep.subr.bf16.mxu0 %v1679_v40  ;;  %628 = vmatpush1.bf16.msra.mxu1 %v1686_v44  ;;  %v1749_v40 = vld [vmem:[#allocation8 + $0x44] ss:$8 sps:$4 sm:$0xff]   ;;  %v1755_v44 = vld [vmem:[#allocation8 + $0x54] ss:$8 sps:$4 sm:$0xff]  }
  0xa8   :  { %629 = vmatprep.subr.bf16.mxu1 %v1687_v46  ;;  %v1753_v46 = vld [vmem:[#allocation8 + $0x50] ss:$8 sps:$4 sm:$0xff]  }
  0xaa   :  { %667 = vmatpush1.bf16.msra.mxu0 %v1677_v43  ;;  %v1750_v43 = vld [vmem:[#allocation10 + $0x40] ss:$8 sps:$4 sm:$0xff]  }
  0xab   :  { %668 = vmatprep.subr.bf16.mxu0 %v1685_v45  ;;  %630 = vmatpush1.bf16.msra.mxu1 %v1692_v48  ;;  %v1758_v45 = vld [vmem:[#allocation10 + $0x54] ss:$8 sps:$4 sm:$0xff]   ;;  %v1761_v48 = vld [vmem:[#allocation8 + $0x64] ss:$8 sps:$4 sm:$0xff]  }
  0xac   :  { %631 = vmatprep.subr.bf16.mxu1 %v1693_v50  ;;  %v1759_v50 = vld [vmem:[#allocation8 + $0x60] ss:$8 sps:$4 sm:$0xff]  }
  0xae   :  { %669 = vmatpush1.bf16.msra.mxu0 %v1683_v47  ;;  %v1756_v47 = vld [vmem:[#allocation10 + $0x50] ss:$8 sps:$4 sm:$0xff]  }
  0xaf   :  { %670 = vmatprep.subr.bf16.mxu0 %v1691_v49  ;;  %632 = vmatpush1.bf16.msra.mxu1 %v1698_v52  ;;  %v1764_v49 = vld [vmem:[#allocation10 + $0x64] ss:$8 sps:$4 sm:$0xff]   ;;  %v1767_v52 = vld [vmem:[#allocation8 + $0x74] ss:$8 sps:$4 sm:$0xff]  }
  0xb0   :  { %633 = vmatprep.subr.bf16.mxu1 %v1699_v54  ;;  %v1765_v54 = vld [vmem:[#allocation8 + $0x70] ss:$8 sps:$4 sm:$0xff]  }
  0xb2   :  { %671 = vmatpush1.bf16.msra.mxu0 %v1689_v51  ;;  %v1762_v51 = vld [vmem:[#allocation10 + $0x60] ss:$8 sps:$4 sm:$0xff]  }
  0xb3   :  { %672 = vmatprep.subr.bf16.mxu0 %v1697_v53  ;;  %634 = vmatpush1.bf16.msra.mxu1 %v1704_v56  ;;  %v1770_v53 = vld [vmem:[#allocation10 + $0x74] ss:$8 sps:$4 sm:$0xff]   ;;  %v1773_v56 = vld [vmem:[#allocation8 + $0x84] ss:$8 sps:$4 sm:$0xff]  }
  0xb4   :  { %635 = vmatprep.subr.bf16.mxu1 %v1705_v58  ;;  %v1771_v58 = vld [vmem:[#allocation8 + $0x80] ss:$8 sps:$4 sm:$0xff]  }
  0xb6   :  { %673 = vmatpush1.bf16.msra.mxu0 %v1695_v55  ;;  %v1768_v55 = vld [vmem:[#allocation10 + $0x70] ss:$8 sps:$4 sm:$0xff]  }
  0xb7   :  { %674 = vmatprep.subr.bf16.mxu0 %v1703_v57  ;;  %636 = vmatpush1.bf16.msra.mxu1 %v1710_v60  ;;  %v1776_v57 = vld [vmem:[#allocation10 + $0x84] ss:$8 sps:$4 sm:$0xff]   ;;  %v1779_v60 = vld [vmem:[#allocation8 + $0x94] ss:$8 sps:$4 sm:$0xff]  }
  0xb8   :  { %637 = vmatprep.subr.bf16.mxu1 %v1711_v63  ;;  %v1780_v63 = vld [vmem:[#allocation10 + $0x90] ss:$8 sps:$4 sm:$0xff]  }
  0xba   :  { %675 = vmatpush1.bf16.msra.mxu0 %v1701_v59  ;;  %v1774_v59 = vld [vmem:[#allocation10 + $0x80] ss:$8 sps:$4 sm:$0xff]  }
  0xbb   :  { %676 = vmatprep.subr.bf16.mxu0 %v1709_v61  ;;  %638 = vmatpush1.bf16.msra.mxu1 %v1716_v2  ;;  %v1782_v61 = vld [vmem:[#allocation10 + $0x94] ss:$8 sps:$4 sm:$0xff]   ;;  %v1783_v2 = vld [vmem:[#allocation8 + $0xa0] ss:$8 sps:$4 sm:$0xff]  }
  0xbc   :  { %639 = vmatprep.subr.bf16.mxu1 %v1717_v3  ;;  %v1786_v3 = vld [vmem:[#allocation10 + $0xa0] ss:$8 sps:$4 sm:$0xff]  }
  0xbe   :  { %677 = vmatpush1.bf16.msra.mxu0 %v1707_v62  ;;  %v1777_v62 = vld [vmem:[#allocation8 + $0x90] ss:$8 sps:$4 sm:$0xff]  }
  0xbf   :  { %678 = vmatprep.subr.bf16.mxu0 %v1715_v0  ;;  %640 = vmatpush1.bf16.msra.mxu1 %v1722_v6  ;;  %v1785_v0 = vld [vmem:[#allocation8 + $0xa4] ss:$8 sps:$4 sm:$0xff]   ;;  %v1789_v6 = vld [vmem:[#allocation8 + $0xb0] ss:$8 sps:$4 sm:$0xff]  }
  0xc0   :  { %897 = vmatprep.subr.bf16.mxu1 %v1725_v7  ;;  %v1792_v7 = vld [vmem:[#allocation10 + $0xb0] ss:$8 sps:$4 sm:$0xff]  }
  0xc2   :  { %679 = vmatpush1.bf16.msra.mxu0 %v1713_v1  ;;  %v1788_v1 = vld [vmem:[#allocation10 + $0xa4] ss:$8 sps:$4 sm:$0xff]  }
  0xc3   :  { %680 = vmatprep.subr.bf16.mxu0 %v1721_v4  ;;  %v1791_v4 = vld [vmem:[#allocation8 + $0xb4] ss:$8 sps:$4 sm:$0xff]  }
  0xc6   :  { %681 = vmatpush1.bf16.msra.mxu0 %v1719_v5  ;;  %v1794_v5 = vld [vmem:[#allocation10 + $0xb4] ss:$8 sps:$4 sm:$0xff]  }
  0xc7   :  { %1142 = vmatprep.subr.bf16.mxu0 %v1728_v8  ;;  %v1797_v8 = vld [vmem:[#allocation8 + $0xc4] ss:$8 sps:$4 sm:$0xff]  }
 0x15c   :  { %v198_v16 = vpop.f32.mrb[0].mxu0 }
 0x15d   :  { %v199_v17 = vadd.f32 %v198_v16, %v135_v14  ;;  %v200_v18 = vpop.f32.mrb[1].mxu0  ;;  %v1798_v14 = vld [vmem:[#allocation10 + $0xc0] ss:$8 sps:$4 sm:$0xff]   ;;  %v1806_v16 = vld [vmem:[#allocation10 + $0xd4] ss:$8 sps:$4 sm:$0xff]  }
 0x15e   :  { %v201_v19 = vadd.f32 %v200_v18, %v139_v15  ;;  %v202_v20 = vpop.f32.mrb[2].mxu0  ;;  %v1803_v15 = vld [vmem:[#allocation8 + $0xd4] ss:$8 sps:$4 sm:$0xff]   ;;  %v1804_v18 = vld [vmem:[#allocation10 + $0xd0] ss:$8 sps:$4 sm:$0xff]  }
 0x15f   :  { %v205_v21 = vmax.f32 %v199_v17, 0.0  ;;  %v203_v22 = vpop.f32.mrb[3].mxu0  ;;  %v1801_v17 = vld [vmem:[#allocation8 + $0xd0] ss:$8 sps:$4 sm:$0xff]   ;;  %v1812_v20 = vld [vmem:[#allocation10 + $0xe4] ss:$8 sps:$4 sm:$0xff]  }
 0x160   :  { %v206_v23 = vmax.f32 %v201_v19, 0.0  ;;  %v1809_v19 = vld [vmem:[#allocation8 + $0xe4] ss:$8 sps:$4 sm:$0xff]   ;;  %v1810_v22 = vld [vmem:[#allocation10 + $0xe0] ss:$8 sps:$4 sm:$0xff]  }
 0x161   :  { %v207_v27 = vpack.c.bf16 %v205_v21, %v205_v21  ;;  %v1807_v21 = vld [vmem:[#allocation8 + $0xe0] ss:$8 sps:$4 sm:$0xff]  }
 0x162   :  { %v208_v24 = vpack.c.bf16 %v206_v23, %v206_v23  ;;  %v1815_v23 = vld [vmem:[#allocation8 + $0xf4] ss:$8 sps:$4 sm:$0xff]  }
 0x164   :  { %641 = vmatprep.mubr.bf16.mxu1 %v208_v24  ;;  %682 = vmatprep.mubr.bf16.mxu0 %v208_v24  ;;  %v1818_v24 = vld [vmem:[#allocation10 + $0xf4] ss:$8 sps:$4 sm:$0xff]  }
 0x165   :  { %642 = vmatmul.mubr.bf16.vlgmr.msra.gmra.mrb[0].mxu1 %v207_v27  ;;  %683 = vmatmul.mubr.bf16.vlgmr.msra.gmra.mrb[4].mxu0 %v207_v27  ;;  %v1819_v27 = vld [vmem:[#allocation11 + $0x40] sm:$0xff]  }
 0x166   :  { %898 = vmatpush1.bf16.msra.mxu1 %v1723_v25  ;;  %1143 = vmatpush1.bf16.msra.mxu0 %v1726_v26  ;;  %v1813_v25 = vld [vmem:[#allocation8 + $0xf0] ss:$8 sps:$4 sm:$0xff]  }
 0x167   :  { %899 = vmatprep.subr.bf16.mxu1 %v1731_v28  ;;  %1144 = vmatprep.subr.bf16.mxu0 %v1734_v29  ;;  %v1816_v26 = vld [vmem:[#allocation10 + $0xf0] ss:$8 sps:$4 sm:$0xff]   ;;  %v275_v28 = vsub.s32 0, %v2199_v10 }
 0x168   :  { %v124_v29 = vld [vmem:[#allocation13 + $0x10] sm:$0xff] }
 0x16a   :  { %900 = vmatpush1.bf16.msra.mxu1 %v1729_v30  ;;  %1145 = vmatpush1.bf16.msra.mxu0 %v1732_v31  ;;  %v125_v30 = vld [vmem:[#allocation13 + $0x18] sm:$0xff]  ;;  %v276_v31 = vrot.slane %v2202_v12, %v275_v28 }
 0x16b   :  { %901 = vmatprep.subr.bf16.mxu1 %v1737_v32  ;;  %1146 = vmatprep.subr.bf16.mxu0 %v1740_v33  ;;  %v284_v32 = vrot.slane %v124_v29, %v275_v28  ;;  %v280_v33 = vrot.slane %v2204_v13, %v275_v28 }
 0x16e   :  { %902 = vmatpush1.bf16.msra.mxu1 %v1735_v34  ;;  %1147 = vmatpush1.bf16.msra.mxu0 %v1738_v35  ;;  %v288_v34 = vrot.slane %v125_v30, %v275_v28 }
 0x16f   :  { %903 = vmatprep.subr.bf16.mxu1 %v1743_v36  ;;  %1148 = vmatprep.subr.bf16.mxu0 %v1746_v37 }
 0x172   :  { %904 = vmatpush1.bf16.msra.mxu1 %v1741_v38  ;;  %1149 = vmatpush1.bf16.msra.mxu0 %v1744_v39 }
 0x173   :  { %905 = vmatprep.subr.bf16.mxu1 %v1749_v40  ;;  %1150 = vmatprep.subr.bf16.mxu0 %v1752_v41 }
 0x176   :  { %906 = vmatpush1.bf16.msra.mxu1 %v1747_v42  ;;  %1151 = vmatpush1.bf16.msra.mxu0 %v1750_v43 }
 0x177   :  { %907 = vmatprep.subr.bf16.mxu1 %v1755_v44  ;;  %1152 = vmatprep.subr.bf16.mxu0 %v1758_v45 }
 0x17a   :  { %908 = vmatpush1.bf16.msra.mxu1 %v1753_v46  ;;  %1153 = vmatpush1.bf16.msra.mxu0 %v1756_v47 }
 0x17b   :  { %909 = vmatprep.subr.bf16.mxu1 %v1761_v48  ;;  %1154 = vmatprep.subr.bf16.mxu0 %v1764_v49 }
 0x17e   :  { %910 = vmatpush1.bf16.msra.mxu1 %v1759_v50  ;;  %1155 = vmatpush1.bf16.msra.mxu0 %v1762_v51 }
 0x17f   :  { %911 = vmatprep.subr.bf16.mxu1 %v1767_v52  ;;  %1156 = vmatprep.subr.bf16.mxu0 %v1770_v53  ;;  %v1820_v53 = vld [vmem:[#allocation11] sm:$0xff]  }
 0x182   :  { %912 = vmatpush1.bf16.msra.mxu1 %v1765_v54  ;;  %1157 = vmatpush1.bf16.msra.mxu0 %v1768_v55 }
 0x183   :  { %913 = vmatprep.subr.bf16.mxu1 %v1773_v56  ;;  %1158 = vmatprep.subr.bf16.mxu0 %v1776_v57  ;;  %v1821_v56 = vld [vmem:[#allocation11 + $0x48] sm:$0xff]  }
 0x184   :  { %v1822_v57 = vld [vmem:[#allocation11 + $0x8] sm:$0xff]  }
 0x186   :  { %914 = vmatpush1.bf16.msra.mxu1 %v1771_v58  ;;  %1159 = vmatpush1.bf16.msra.mxu0 %v1774_v59  ;;  %v1823_v58 = vld [vmem:[#allocation11 + $0x50] sm:$0xff]  }
 0x187   :  { %915 = vmatprep.subr.bf16.mxu1 %v1779_v60  ;;  %1160 = vmatprep.subr.bf16.mxu0 %v1782_v61  ;;  %v1824_v59 = vld [vmem:[#allocation11 + $0x10] sm:$0xff]   ;;  %v1825_v60 = vld [vmem:[#allocation11 + $0x58] sm:$0xff]  }
 0x188   :  { %v1826_v61 = vld [vmem:[#allocation11 + $0x18] sm:$0xff]  }
 0x18a   :  { %916 = vmatpush1.bf16.msra.mxu1 %v1777_v62  ;;  %1161 = vmatpush1.bf16.msra.mxu0 %v1780_v63  ;;  %v1827_v62 = vld [vmem:[#allocation11 + $0x60] sm:$0xff]  }
 0x18b   :  { %917 = vmatprep.subr.bf16.mxu1 %v1785_v0  ;;  %1162 = vmatprep.subr.bf16.mxu0 %v1788_v1  ;;  %v1828_v63 = vld [vmem:[#allocation11 + $0x20] sm:$0xff]   ;;  %v1829_v0 = vld [vmem:[#allocation11 + $0x68] sm:$0xff]  }
 0x18c   :  { %v1830_v1 = vld [vmem:[#allocation11 + $0x28] sm:$0xff]  }
 0x18e   :  { %918 = vmatpush1.bf16.msra.mxu1 %v1783_v2  ;;  %1163 = vmatpush1.bf16.msra.mxu0 %v1786_v3  ;;  %v1831_v2 = vld [vmem:[#allocation11 + $0x70] sm:$0xff]  }
 0x18f   :  { %919 = vmatprep.subr.bf16.mxu1 %v1791_v4  ;;  %1164 = vmatprep.subr.bf16.mxu0 %v1794_v5  ;;  %v1832_v3 = vld [vmem:[#allocation11 + $0x30] sm:$0xff]   ;;  %v1833_v4 = vld [vmem:[#allocation11 + $0x78] sm:$0xff]  }
 0x190   :  { %v1834_v5 = vld [vmem:[#allocation11 + $0x38] sm:$0xff]  }
 0x192   :  { %920 = vmatpush1.bf16.msra.mxu1 %v1789_v6  ;;  %1165 = vmatpush1.bf16.msra.mxu0 %v1792_v7  ;;  %v731_v6 = vsub.s32 2, %v2199_v10  ;;  %v976_v7 = vsub.s32 3, %v2199_v10 }
 0x193   :  { %921 = vmatprep.subr.bf16.mxu1 %v1797_v8  ;;  %1166 = vmatprep.subr.bf16.mxu0 %v1800_v9 }
 0x194   :  { %v732_v8 = vrot.slane %v2202_v12, %v731_v6  ;;  %v977_v9 = vrot.slane %v2202_v12, %v976_v7 }
 0x196   :  { %922 = vmatpush1.bf16.msra.mxu1 %v1795_v11  ;;  %1167 = vmatpush1.bf16.msra.mxu0 %v1798_v14  ;;  %v1361_v11 = vsub.s32 6, %v2199_v10  ;;  %v736_v14 = vrot.slane %v2204_v13, %v731_v6 }
 0x197   :  { %923 = vmatprep.subr.bf16.mxu1 %v1803_v15  ;;  %1168 = vmatprep.subr.bf16.mxu0 %v1806_v16  ;;  %v981_v15 = vrot.slane %v2204_v13, %v976_v7 }
 0x19a   :  { %924 = vmatpush1.bf16.msra.mxu1 %v1801_v17  ;;  %1169 = vmatpush1.bf16.msra.mxu0 %v1804_v18 }
 0x19b   :  { %925 = vmatprep.subr.bf16.mxu1 %v1809_v19  ;;  %1170 = vmatprep.subr.bf16.mxu0 %v1812_v20 }
 0x19e   :  { %926 = vmatpush1.bf16.msra.mxu1 %v1807_v21  ;;  %1171 = vmatpush1.bf16.msra.mxu0 %v1810_v22  ;;  %v1362_v22 = vrot.slane %v2202_v12, %v1361_v11 }
 0x19f   :  { %927 = vmatprep.subr.bf16.mxu1 %v1815_v23  ;;  %1172 = vmatprep.subr.bf16.mxu0 %v1818_v24 }
 0x1a2   :  { %928 = vmatpush1.bf16.msra.mxu1 %v1813_v25  ;;  %1173 = vmatpush1.bf16.msra.mxu0 %v1816_v26 }
 0x1a3   :  { %1582 = vmatprep.subr.bf16.mxu1 %v1819_v27  ;;  %v1366_v27 = vrot.slane %v2204_v13, %v1361_v11 }
 0x238   :  { %v643_v35 = vpop.f32.mrb[0].mxu1  ;;  %v684_v36 = vpop.f32.mrb[4].mxu0 }
 0x239   :  { %v644_v37 = vadd.f32 %v643_v35, %v276_v31  ;;  %v685_v38 = vadd.f32 %v684_v36, %v284_v32  ;;  %v645_v39 = vpop.f32.mrb[1].mxu1  ;;  %v686_v40 = vpop.f32.mrb[5].mxu0 }
 0x23a   :  { %v646_v41 = vadd.f32 %v645_v39, %v280_v33  ;;  %v687_v42 = vadd.f32 %v686_v40, %v288_v34  ;;  %v647_v43 = vpop.f32.mrb[2].mxu1  ;;  %v688_v44 = vpop.f32.mrb[6].mxu0  ;;  %v1374_v39 = vsub.s32 5, %v2199_v10 }
 0x23b   :  { %v691_v45 = vmax.f32 %v644_v37, 0.0  ;;  %v693_v46 = vmax.f32 %v685_v38, 0.0  ;;  %v648_v47 = vpop.f32.mrb[3].mxu1  ;;  %v689_v48 = vpop.f32.mrb[7].mxu0 }
 0x23c   :  { %v692_v49 = vmax.f32 %v646_v41, 0.0  ;;  %v694_v50 = vmax.f32 %v687_v42, 0.0  ;;  %v1375_v40 = vrot.slane %v2202_v12, %v1374_v39  ;;  %v1221_v42 = vsub.s32 4, %v2199_v10 }
 0x23d   :  { %v695_v54 = vpack.c.bf16 %v691_v45, %v691_v45  ;;  %v940_v55 = vpack.c.bf16 %v693_v46, %v693_v46 }
 0x23e   :  { %v696_v51 = vpack.c.bf16 %v692_v49, %v692_v49  ;;  %v941_v52 = vpack.c.bf16 %v694_v50, %v694_v50  ;;  %v1222_v44 = vrot.slane %v2202_v12, %v1221_v42 }
 0x240   :  { %929 = vmatprep.mubr.bf16.mxu1 %v696_v51  ;;  %1174 = vmatprep.mubr.bf16.mxu0 %v941_v52 }
 0x241   :  { %930 = vmatmul.mubr.bf16.vlgmr.msra.gmra.mrb[4].mxu1 %v695_v54  ;;  %1175 = vmatmul.mubr.bf16.vlgmr.msra.gmra.mrb[8].mxu0 %v940_v55 }
 0x242   :  { %1583 = vmatpush3.bf16.msra.mxu1 %v1820_v53 }
 0x243   :  { %1584 = vmatprep.subr.bf16.mxu1 %v1821_v56 }
 0x246   :  { %1585 = vmatpush3.bf16.msra.mxu1 %v1822_v57 }
 0x247   :  { %1586 = vmatprep.subr.bf16.mxu1 %v1823_v58 }
 0x24a   :  { %1587 = vmatpush3.bf16.msra.mxu1 %v1824_v59 }
 0x24b   :  { %1588 = vmatprep.subr.bf16.mxu1 %v1825_v60 }
 0x24e   :  { %1589 = vmatpush3.bf16.msra.mxu1 %v1826_v61 }
 0x24f   :  { %1590 = vmatprep.subr.bf16.mxu1 %v1827_v62 }
 0x252   :  { %1591 = vmatpush3.bf16.msra.mxu1 %v1828_v63 }
 0x253   :  { %1592 = vmatprep.subr.bf16.mxu1 %v1829_v0 }
 0x256   :  { %1593 = vmatpush3.bf16.msra.mxu1 %v1830_v1 }
 0x257   :  { %1594 = vmatprep.subr.bf16.mxu1 %v1831_v2 }
 0x25a   :  { %1595 = vmatpush3.bf16.msra.mxu1 %v1832_v3 }
 0x25b   :  { %1596 = vmatprep.subr.bf16.mxu1 %v1833_v4 }
 0x25e   :  { %1597 = vmatpush3.bf16.msra.mxu1 %v1834_v5 }
 0x314   :  { %v931_v16 = vpop.f32.mrb[4].mxu1  ;;  %v1176_v17 = vpop.f32.mrb[8].mxu0 }
 0x315   :  { %v932_v18 = vadd.f32 %v931_v16, %v732_v8  ;;  %v1177_v19 = vadd.f32 %v1176_v17, %v977_v9  ;;  %v933_v20 = vpop.f32.mrb[5].mxu1  ;;  %v1178_v21 = vpop.f32.mrb[9].mxu0 }
 0x316   :  { %v934_v23 = vadd.f32 %v933_v20, %v736_v14  ;;  %v1179_v24 = vadd.f32 %v1178_v21, %v981_v15  ;;  %v935_v25 = vpop.f32.mrb[6].mxu1  ;;  %v1180_v26 = vpop.f32.mrb[10].mxu0 }
 0x317   :  { %v938_v28 = vmax.f32 %v932_v18, 0.0  ;;  %v1183_v29 = vmax.f32 %v1177_v19, 0.0  ;;  %v936_v30 = vpop.f32.mrb[7].mxu1  ;;  %v1181_v31 = vpop.f32.mrb[11].mxu0 }
 0x318   :  { %v939_v32 = vmax.f32 %v934_v23, 0.0  ;;  %v1184_v33 = vmax.f32 %v1179_v24, 0.0 }
 0x319   :  { %v1367_v34 = vmul.f32 %v1362_v22, %v1183_v29  ;;  %v1185_v37 = vpack.c.bf16 %v938_v28, %v938_v28 }
 0x31a   :  { %v1186_v35 = vpack.c.bf16 %v939_v32, %v939_v32  ;;  %v1368_v36 = vmul.f32 %v1366_v27, %v1184_v33 }
 0x31c   :  { %1351 = vmatprep.mubr.bf16.mxu1 %v1186_v35  ;;  %v1369_v38 = vadd.f32 %v1368_v36, %v1367_v34 }
 0x31d   :  { %1352 = vmatmul.mubr.bf16.vlgmr.msra.gmra.mrb[8].mxu1 %v1185_v37 }
 0x31e   :  { %1370 = vadd.xlane.f32.xlu0 %v1369_v38 }
 0x3ab   :  { %v1371_v41 = vpop.xlane.xlu0 %1370 }
 0x3ac   :  { %v1376_v13 = vadd.f32 %v1375_v40, %v1371_v41 }
 0x3ae   :  { %1379 = vperm.xlu0 %1620, %v1376_v13  }
 0x3f0   :  { %v1598_v43 = vpop.f32.mrb[8].mxu1 }
 0x3f1   :  { %v1599_v45 = vpop.f32.mrb[9].mxu1 }
 0x3f2   :  { %v1600_v46 = vadd.f32 %v1599_v45, %v1598_v43  ;;  %v1601_v47 = vpop.f32.mrb[10].mxu1 }
 0x3f3   :  { %v1602_v48 = vpop.f32.mrb[11].mxu1 }
 0x3f4   :  { %v1354_v49 = vadd.f32 %v1600_v46, %v1222_v44 }
 0x3f6   :  { %v1393_v50 = vsel %vm1390_vm1, %v1354_v49, 0.0 }
 0x3f7   :  { %v1394_v51 = vrot.slane %v1393_v50, 4 }
 0x3f9   :  { %v1395_v52 = vadd.f32 %v1394_v51, %v1393_v50 }
 0x3fb   :  { %v1396_v53 = vrot.slane %v1395_v52, 2 }
 0x3fd   :  { %v1397_v54 = vadd.f32 %v1396_v53, %v1395_v52 }
 0x3ff   :  { %v1398_v55 = vrot.slane %v1397_v54, 1 }
 0x401   :  { %v1399_v56 = vadd.f32 %v1398_v55, %v1397_v54 }
 0x403   :  { %1400 = vst [vmem:[#allocation15] sm:$0x1] %v1399_v56 }
 0x404   :  { %2000 = shalt.err (!%p1997_p4)
}
 0x405   :  { %s2001_s29 = scalar_lea.hbm %s2257_s8, 16 }
 0x406   :  { %p2002_p5 = scmp.ne.s32.totalorder %s2257_s8, %s2001_s29  ;;  %p2005_p6 = scmp.lt.u32.totalorder %s2001_s29, %s2257_s8 }
 0x408   :  { %p2007_p7 = pnand %p2005_p6, %p2002_p5 }
 0x40a   :  { %2010 = shalt.err (!%p2007_p7)
}
 0x40b   :  { %1420 = dma.vmem_to_hbm [thread:$0]  %s1418_s16, 16, %s2257_s8, [#allocation16]   ;;  %vm1383_vm2 = vcmask 64512  }
 0x40c   :  { %s2060_s5 = smov [#allocation14]  }
 0x40d   :  { %s1407_s22 = sshll.u32 %s2060_s5, 4  ;;  %s1408_s22 = int_to_ptr.vmem [resolvable:$true] %s1407_s22 }
 0x40e   :  { %s2011_s12 = scalar_lea.vmem %s1408_s22, 128  ;;  %p2016_p9 = scmp.lt.s32.totalorder %s1408_s22, %s1408_s22 }
 0x40f   :  { %p2012_p8 = scmp.ne.s32.totalorder %s1408_s22, %s2011_s12  ;;  %p2017_p10 = scmp.lt.s32.totalorder %s2011_s12, %s2011_s12 }
 0x411   :  { %p2018_p11 = por %p2017_p10, %p2016_p9 }
 0x413   :  { %p2019_p12 = pnand %p2018_p11, %p2012_p8 }
 0x42d   :  { %v1380_v10 = vpop.permute.xlu0 %1379 }
 0x42e   :  { %v1382_v12 = vadd.f32 %v1380_v10, %v1354_v49 }
 0x430   :  { %1384 = vst.msk [vmem:[#allocation14] sm:$0xff] %vm1383_vm2, %v1382_v12 }
 0x431   :  { %2022 = shalt.err (!%p2019_p12)
}
 0x432   :  { %s2023_s13 = scalar_lea.hbm %s2256_s7, 128 }
 0x433   :  { %p2024_p13 = scmp.ne.s32.totalorder %s2256_s7, %s2023_s13  ;;  %p2027_p0 = scmp.lt.u32.totalorder %s2023_s13, %s2256_s7 }
 0x435   :  { %p2029_p1 = pnand %p2027_p0, %p2024_p13 }
 0x437   :  { %2032 = shalt.err (!%p2029_p1)
}
 0x438   :  { %1410 = dma.vmem_to_hbm [thread:$0]  %s1408_s22, 128, %s2256_s7, [#allocation4]  }
 0x439   :  { %2041 = dma.done.wait [#allocation4], 128  }
 0x43a   :  { %2042 = vsyncadd [#allocation4], 4294967168 }
 0x43b   :  { %2043 = dma.done.wait [#allocation16], 16  }
 0x43c   :  { %2044 = vsyncadd [#allocation16], 4294967280 }
 0x43d   :  { %1427 = vsyncpa [#allocation3], 1 }
 0x43e   :  { %1428 = vsyncpa [#allocation6], 1 }
 0x43f   :  { %1429 = vsyncpa [#allocation9], 1 }
 0x440   :  { %1430 = vsyncpa [#allocation12], 1 }
 0x441   :  { %1431 = vsyncpa [#allocation4], 1 }
 0x442   :  { %1432 = vsyncpa [#allocation16], 1 }

// kernel: tpu_custom_call.1
= control target key start
LH: loop header
LB: loop body
LE: loop exit
PB: predicated region body
PF: predicated region fallthrough
CT: control target
= control target key end

     0   :  { %14 = vsyncpa [#allocation3], 0  ;;  %s2249_s0 = inlined_call_operand.hbm [shape: f32[8,32], index: 0, kind: input, shape index: {}]   ;;  %s2250_s1 = inlined_call_operand.hbm [shape: bf16[32,256], index: 1, kind: input, shape index: {}]   ;;  %s2251_s2 = inlined_call_operand.hbm [shape: bf16[256,512], index: 2, kind: input, shape index: {}]   ;;  %s2252_s3 = inlined_call_operand.hbm [shape: bf16[256,256], index: 3, kind: input, shape index: {}]   ;;  %s2253_s4 = inlined_call_operand.hbm [shape: bf16[256,256], index: 4, kind: input, shape index: {}]   ;;  %s2254_s5 = inlined_call_operand.hbm [shape: bf16[256,128], index: 5, kind: input, shape index: {}]   ;;  %s2255_s6 = inlined_call_operand.hbm [shape: f32[8,512], index: 6, kind: input, shape index: {}]   ;;  %s2256_s7 = inlined_call_operand.hbm [shape: f32[8,8], index: 7, kind: output, shape index: {0}]   ;;  %s2257_s8 = inlined_call_operand.hbm [shape: f32[1,1,128], index: 8, kind: output, shape index: {1}]  }
   0x1   :  { %15 = vsyncpa [#allocation6], 0 }
   0x2   :  { %16 = vsyncpa [#allocation9], 0 }
   0x3   :  { %17 = vsyncpa [#allocation12], 0 }
   0x4   :  { %18 = vsyncpa [#allocation4], 0 }
   0x5   :  { %19 = vsyncpa [#allocation16], 0  ;;  %s2045_s27 = smov [#allocation5]   ;;  %s1835_s9 = scalar_lea.hbm %s2250_s1, 512 }
   0x6   :  { %s35_s28 = sshll.u32 %s2045_s27, 4  ;;  %p1836_p0 = scmp.ne.s32.totalorder %s2250_s1, %s1835_s9  ;;  %s36_s28 = int_to_ptr.vmem [resolvable:$true] %s35_s28 }
   0x7   :  { %p1839_p1 = scmp.lt.u32.totalorder %s1835_s9, %s2250_s1 }
   0x9   :  { %p1841_p2 = pnand %p1839_p1, %p1836_p0 }
   0xb   :  { %1844 = shalt.err (!%p1841_p2)
}
   0xc   :  { %s1845_s14 = scalar_lea.vmem %s36_s28, 512  ;;  %p1850_p4 = scmp.lt.s32.totalorder %s36_s28, %s36_s28 }
   0xd   :  { %p1846_p3 = scmp.ne.s32.totalorder %s36_s28, %s1845_s14  ;;  %p1851_p5 = scmp.lt.s32.totalorder %s1845_s14, %s1845_s14 }
   0xf   :  { %p1852_p6 = por %p1851_p5, %p1850_p4 }
  0x11   :  { %p1853_p7 = pnand %p1852_p6, %p1846_p3 }
  0x13   :  { %1856 = shalt.err (!%p1853_p7)
}
  0x14   :  { %s2046_s15 = smov 128   ;;  %s2047_s16 = smov 8  }
  0x15   :  { %41 = dma.hbm_to_vmem [thread:$0]  %s2250_s1, 512, %s36_s28, [#allocation6], %s2046_s15, %s2046_s15, %s2047_s16  }
  0x16   :  { %s2048_s19 = smov [#allocation8]   ;;  %s2049_s21 = smov [#allocation11]  }
  0x17   :  { %s59_s20 = sshll.u32 %s2048_s19, 4  ;;  %s83_s22 = sshll.u32 %s2049_s21, 4  ;;  %s60_s20 = int_to_ptr.vmem [resolvable:$true] %s59_s20  ;;  %s84_s22 = int_to_ptr.vmem [resolvable:$true] %s83_s22 }
  0x18   :  { %s1857_s25 = scalar_lea.hbm %s2252_s3, 4096 }
  0x19   :  { %p1858_p8 = scmp.ne.s32.totalorder %s2252_s3, %s1857_s25  ;;  %p1861_p9 = scmp.lt.u32.totalorder %s1857_s25, %s2252_s3 }
  0x1b   :  { %p1863_p10 = pnand %p1861_p9, %p1858_p8 }
  0x1d   :  { %1866 = shalt.err (!%p1863_p10)
}
  0x1e   :  { %s1867_s1 = scalar_lea.vmem %s60_s20, 4096  ;;  %p1872_p12 = scmp.lt.s32.totalorder %s60_s20, %s60_s20 }
  0x1f   :  { %p1868_p11 = scmp.ne.s32.totalorder %s60_s20, %s1867_s1  ;;  %p1873_p13 = scmp.lt.s32.totalorder %s1867_s1, %s1867_s1 }
  0x21   :  { %p1874_p0 = por %p1873_p13, %p1872_p12 }
  0x23   :  { %p1875_p1 = pnand %p1874_p0, %p1868_p11 }
  0x25   :  { %1878 = shalt.err (!%p1875_p1)
}
  0x26   :  { %65 = dma.hbm_to_vmem [thread:$0]  %s2252_s3, 4096, %s60_s20, [#allocation9], %s2046_s15, %s2046_s15, %s2047_s16  }
  0x27   :  { %s1879_s12 = scalar_lea.hbm %s2254_s5, 2048 }
  0x28   :  { %p1880_p2 = scmp.ne.s32.totalorder %s2254_s5, %s1879_s12  ;;  %p1883_p3 = scmp.lt.u32.totalorder %s1879_s12, %s2254_s5 }
  0x2a   :  { %p1885_p4 = pnand %p1883_p3, %p1880_p2 }
  0x2c   :  { %1888 = shalt.err (!%p1885_p4)
}
  0x2d   :  { %s1889_s19 = scalar_lea.vmem %s84_s22, 2048  ;;  %p1894_p6 = scmp.lt.s32.totalorder %s84_s22, %s84_s22 }
  0x2e   :  { %p1890_p5 = scmp.ne.s32.totalorder %s84_s22, %s1889_s19  ;;  %p1895_p7 = scmp.lt.s32.totalorder %s1889_s19, %s1889_s19 }
  0x30   :  { %p1896_p8 = por %p1895_p7, %p1894_p6 }
  0x32   :  { %p1897_p9 = pnand %p1896_p8, %p1890_p5 }
  0x34   :  { %1900 = shalt.err (!%p1897_p9)
}
  0x35   :  { %s2050_s3 = smov 64   ;;  %s2051_s20 = smov 4  }
  0x36   :  { %89 = dma.hbm_to_vmem [thread:$0]  %s2254_s5, 2048, %s84_s22, [#allocation12], %s2050_s3, %s2050_s3, %s2051_s20  }
  0x37   :  { %s2052_s24 = smov [#allocation2]   ;;  %s2053_s26 = smov [#allocation7]  }
  0x38   :  { %s26_s25 = sshll.u32 %s2052_s24, 4  ;;  %s47_s27 = sshll.u32 %s2053_s26, 4  ;;  %s27_s25 = int_to_ptr.vmem [resolvable:$true] %s26_s25  ;;  %s48_s27 = int_to_ptr.vmem [resolvable:$true] %s47_s27 }
  0x39   :  { %s1901_s1 = scalar_lea.hbm %s2249_s0, 128 }
  0x3a   :  { %p1902_p10 = scmp.ne.s32.totalorder %s2249_s0, %s1901_s1  ;;  %p1905_p11 = scmp.lt.u32.totalorder %s1901_s1, %s2249_s0 }
  0x3c   :  { %p1907_p12 = pnand %p1905_p11, %p1902_p10 }
  0x3e   :  { %1910 = shalt.err (!%p1907_p12)
}
  0x3f   :  { %s1911_s5 = scalar_lea.vmem %s27_s25, 128  ;;  %p1916_p0 = scmp.lt.s32.totalorder %s27_s25, %s27_s25 }
  0x40   :  { %p1912_p13 = scmp.ne.s32.totalorder %s27_s25, %s1911_s5  ;;  %p1917_p1 = scmp.lt.s32.totalorder %s1911_s5, %s1911_s5 }
  0x42   :  { %p1918_p2 = por %p1917_p1, %p1916_p0 }
  0x44   :  { %p1919_p3 = pnand %p1918_p2, %p1912_p13 }
  0x46   :  { %1922 = shalt.err (!%p1919_p3)
}
  0x47   :  { %29 = dma.hbm_to_vmem [thread:$0]  %s2249_s0, 128, %s27_s25, [#allocation3]  }
  0x48   :  { %s1923_s17 = scalar_lea.hbm %s2251_s2, 8192 }
  0x49   :  { %p1924_p4 = scmp.ne.s32.totalorder %s2251_s2, %s1923_s17  ;;  %p1927_p5 = scmp.lt.u32.totalorder %s1923_s17, %s2251_s2 }
  0x4b   :  { %p1929_p6 = pnand %p1927_p5, %p1924_p4 }
  0x4d   :  { %1932 = shalt.err (!%p1929_p6)
}
  0x4e   :  { %s1933_s21 = scalar_lea.vmem %s48_s27, 8192  ;;  %p1938_p8 = scmp.lt.s32.totalorder %s48_s27, %s48_s27 }
  0x4f   :  { %p1934_p7 = scmp.ne.s32.totalorder %s48_s27, %s1933_s21  ;;  %p1939_p9 = scmp.lt.s32.totalorder %s1933_s21, %s1933_s21 }
  0x51   :  { %p1940_p10 = por %p1939_p9, %p1938_p8 }
  0x53   :  { %p1941_p11 = pnand %p1940_p10, %p1934_p7 }
  0x55   :  { %1944 = shalt.err (!%p1941_p11)
}
  0x56   :  { %s2054_s0 = smov 256   ;;  %s2055_s23 = smov 16  }
  0x57   :  { %53 = dma.hbm_to_vmem [thread:$0]  %s2251_s2, 8192, %s48_s27, [#allocation6], %s2054_s0, %s2054_s0, %s2055_s23  }
  0x58   :  { %s2056_s26 = smov [#allocation10]   ;;  %s2057_s30 = smov [#allocation13]  }
  0x59   :  { %s71_s29 = sshll.u32 %s2056_s26, 4  ;;  %s96_s1 = sshll.u32 %s2057_s30, 4  ;;  %s72_s29 = int_to_ptr.vmem [resolvable:$true] %s71_s29  ;;  %s97_s1 = int_to_ptr.vmem [resolvable:$true] %s96_s1 }
  0x5a   :  { %s1945_s10 = scalar_lea.hbm %s2253_s4, 4096 }
  0x5b   :  { %p1946_p12 = scmp.ne.s32.totalorder %s2253_s4, %s1945_s10  ;;  %p1949_p13 = scmp.lt.u32.totalorder %s1945_s10, %s2253_s4 }
  0x5d   :  { %p1951_p0 = pnand %p1949_p13, %p1946_p12 }
  0x5f   :  { %1954 = shalt.err (!%p1951_p0)
}
  0x60   :  { %s1955_s2 = scalar_lea.vmem %s72_s29, 4096  ;;  %p1960_p2 = scmp.lt.s32.totalorder %s72_s29, %s72_s29 }
  0x61   :  { %p1956_p1 = scmp.ne.s32.totalorder %s72_s29, %s1955_s2  ;;  %p1961_p3 = scmp.lt.s32.totalorder %s1955_s2, %s1955_s2 }
  0x63   :  { %p1962_p4 = por %p1961_p3, %p1960_p2 }
  0x65   :  { %p1963_p5 = pnand %p1962_p4, %p1956_p1 }
  0x67   :  { %1966 = shalt.err (!%p1963_p5)
}
  0x68   :  { %77 = dma.hbm_to_vmem [thread:$0]  %s2253_s4, 4096, %s72_s29, [#allocation9], %s2046_s15, %s2046_s15, %s2047_s16  }
  0x69   :  { %s1967_s18 = scalar_lea.hbm %s2255_s6, 512 }
  0x6a   :  { %p1968_p6 = scmp.ne.s32.totalorder %s2255_s6, %s1967_s18  ;;  %p1971_p7 = scmp.lt.u32.totalorder %s1967_s18, %s2255_s6 }
  0x6c   :  { %p1973_p8 = pnand %p1971_p7, %p1968_p6 }
  0x6e   :  { %1976 = shalt.err (!%p1973_p8)
}
  0x6f   :  { %s1977_s0 = scalar_lea.vmem %s97_s1, 512  ;;  %p1982_p10 = scmp.lt.s32.totalorder %s97_s1, %s97_s1 }
  0x70   :  { %p1978_p9 = scmp.ne.s32.totalorder %s97_s1, %s1977_s0  ;;  %p1983_p11 = scmp.lt.s32.totalorder %s1977_s0, %s1977_s0 }
  0x72   :  { %p1984_p12 = por %p1983_p11, %p1982_p10 }
  0x74   :  { %p1985_p13 = pnand %p1984_p12, %p1978_p9 }
  0x76   :  { %1988 = shalt.err (!%p1985_p13)
}
  0x77   :  { %99 = dma.hbm_to_vmem [thread:$0]  %s2255_s6, 512, %s97_s1, [#allocation12]  }
  0x78   :  { %2033 = dma.done.wait [#allocation3], 128  }
  0x79   :  { %2034 = vsyncadd [#allocation3], 4294967168 }
  0x7a   :  { %2035 = dma.done.wait [#allocation6], 8704  }
  0x7b   :  { %2036 = vsyncadd [#allocation6], 4294958592 }
  0x7c   :  { %2037 = dma.done.wait [#allocation9], 8192  }
  0x7d   :  { %2038 = vsyncadd [#allocation9], 4294959104 }
  0x7e   :  { %2039 = dma.done.wait [#allocation12], 2560  }
  0x7f   :  { %2040 = vsyncadd [#allocation12], 4294964736  ;;  %v2058_v0 = vmov 0   ;;  %v1621_v1 = vld [vmem:[#allocation5 + $0x4] ss:$8 sps:$4 sm:$0xff]   ;;  %v126_v5 = vld [vmem:[#allocation2] sm:$0xff] }
  0x80   :  { %196 = vmatprep.mubr.bf16.mxu0 %v2058_v0  ;;  %1620 = vset.pattern.permute.xlu0 %v2058_v0  ;;  %v1623_v2 = vld [vmem:[#allocation5] ss:$8 sps:$4 sm:$0xff]   ;;  %v1624_v3 = vld [vmem:[#allocation5 + $0x14] ss:$8 sps:$4 sm:$0xff]   ;;  %v1626_v4 = vld [vmem:[#allocation5 + $0x10] ss:$8 sps:$4 sm:$0xff]   ;;  %v127_v9 = vpack.c.bf16 %v126_v5, %v126_v5 }
  0x81   :  { %164 = vmatprep.subr.bf16.mxu0 %v1621_v1  ;;  %v1627_v6 = vld [vmem:[#allocation7 + $0x4] ss:$16 sps:$4 sm:$0xff]   ;;  %v1631_v7 = vld [vmem:[#allocation7 + $0xc] ss:$16 sps:$4 sm:$0xff]   ;;  %v1632_v8 = vld [vmem:[#allocation7] ss:$16 sps:$4 sm:$0xff]  }
  0x82   :  { %165 = vmatpush1.bf16.msra.mxu0 %v1623_v2  ;;  %609 = vmatprep.subr.bf16.mxu1 %v1627_v6  ;;  %v1633_v10 = vld [vmem:[#allocation7 + $0x24] ss:$16 sps:$4 sm:$0xff]   ;;  %vm160_vm0 = vcmask 261120   ;;  %v1629_v11 = vld [vmem:[#allocation7 + $0x8] ss:$16 sps:$4 sm:$0xff]   ;;  %s2059_s6 = smov [#allocation15]  }
  0x83   :  { %166 = vmatprep.subr.bf16.mxu0 %v1624_v3  ;;  %610 = vmatpush1.bf16.msra.mxu1 %v1632_v8  ;;  %v1637_v12 = vld [vmem:[#allocation7 + $0x2c] ss:$16 sps:$4 sm:$0xff]   ;;  %v1638_v13 = vld [vmem:[#allocation7 + $0x20] ss:$16 sps:$4 sm:$0xff]   ;;  %v1639_v14 = vld [vmem:[#allocation7 + $0x44] ss:$16 sps:$4 sm:$0xff]  }
  0x84   :  { %611 = vmatprep.subr.bf16.mxu1 %v1633_v10  ;;  %v1635_v15 = vld [vmem:[#allocation7 + $0x28] ss:$16 sps:$4 sm:$0xff]   ;;  %v1643_v16 = vld [vmem:[#allocation7 + $0x4c] ss:$16 sps:$4 sm:$0xff]   ;;  %v1644_v17 = vld [vmem:[#allocation7 + $0x40] ss:$16 sps:$4 sm:$0xff]  }
  0x85   :  { %v1645_v18 = vld [vmem:[#allocation7 + $0x64] ss:$16 sps:$4 sm:$0xff]   ;;  %v1641_v19 = vld [vmem:[#allocation7 + $0x48] ss:$16 sps:$4 sm:$0xff]   ;;  %v1649_v20 = vld [vmem:[#allocation7 + $0x6c] ss:$16 sps:$4 sm:$0xff]  }
  0x86   :  { %167 = vmatpush1.bf16.msra.mxu0 %v1626_v4  ;;  %v1650_v21 = vld [vmem:[#allocation7 + $0x60] ss:$16 sps:$4 sm:$0xff]   ;;  %v1651_v22 = vld [vmem:[#allocation7 + $0x84] ss:$16 sps:$4 sm:$0xff]   ;;  %v1647_v23 = vld [vmem:[#allocation7 + $0x68] ss:$16 sps:$4 sm:$0xff]  }
  0x87   :  { %650 = vmatprep.subr.bf16.mxu0 %v1631_v7  ;;  %612 = vmatpush1.bf16.msra.mxu1 %v1638_v13  ;;  %v1655_v24 = vld [vmem:[#allocation7 + $0x8c] ss:$16 sps:$4 sm:$0xff]   ;;  %v1656_v25 = vld [vmem:[#allocation7 + $0x80] ss:$16 sps:$4 sm:$0xff]   ;;  %v1657_v26 = vld [vmem:[#allocation7 + $0xa4] ss:$16 sps:$4 sm:$0xff]  }
  0x88   :  { %613 = vmatprep.subr.bf16.mxu1 %v1639_v14  ;;  %v1653_v27 = vld [vmem:[#allocation7 + $0x88] ss:$16 sps:$4 sm:$0xff]   ;;  %v1661_v28 = vld [vmem:[#allocation7 + $0xac] ss:$16 sps:$4 sm:$0xff]   ;;  %v1662_v29 = vld [vmem:[#allocation7 + $0xa0] ss:$16 sps:$4 sm:$0xff]  }
  0x89   :  { %1437 = vmatmul.mubr.msk.bf16.vlgmr.msra.gmra.mrb[0].mxu0 %vm160_vm0, %v127_v9  ;;  %v1663_v30 = vld [vmem:[#allocation7 + $0xc4] ss:$16 sps:$4 sm:$0xff]   ;;  %v1659_v31 = vld [vmem:[#allocation7 + $0xa8] ss:$16 sps:$4 sm:$0xff]   ;;  %v1667_v32 = vld [vmem:[#allocation7 + $0xcc] ss:$16 sps:$4 sm:$0xff]   ;;  %v132_v9 = vlaneseq }
  0x8a   :  { %651 = vmatpush1.bf16.msra.mxu0 %v1629_v11  ;;  %v1668_v33 = vld [vmem:[#allocation7 + $0xc0] ss:$16 sps:$4 sm:$0xff]   ;;  %v1669_v34 = vld [vmem:[#allocation7 + $0xe4] ss:$16 sps:$4 sm:$0xff]   ;;  %v1665_v35 = vld [vmem:[#allocation7 + $0xc8] ss:$16 sps:$4 sm:$0xff]  }
  0x8b   :  { %652 = vmatprep.subr.bf16.mxu0 %v1637_v12  ;;  %614 = vmatpush1.bf16.msra.mxu1 %v1644_v17  ;;  %v1673_v36 = vld [vmem:[#allocation7 + $0xec] ss:$16 sps:$4 sm:$0xff]   ;;  %v1674_v37 = vld [vmem:[#allocation7 + $0xe0] ss:$16 sps:$4 sm:$0xff]   ;;  %v1675_v38 = vld [vmem:[#allocation7 + $0x104] ss:$16 sps:$4 sm:$0xff]  }
  0x8c   :  { %615 = vmatprep.subr.bf16.mxu1 %v1645_v18  ;;  %v1671_v39 = vld [vmem:[#allocation7 + $0xe8] ss:$16 sps:$4 sm:$0xff]   ;;  %v1679_v40 = vld [vmem:[#allocation7 + $0x10c] ss:$16 sps:$4 sm:$0xff]   ;;  %v1680_v41 = vld [vmem:[#allocation7 + $0x100] ss:$16 sps:$4 sm:$0xff]  }
  0x8d   :  { %v1681_v42 = vld [vmem:[#allocation7 + $0x124] ss:$16 sps:$4 sm:$0xff]   ;;  %v1677_v43 = vld [vmem:[#allocation7 + $0x108] ss:$16 sps:$4 sm:$0xff]   ;;  %v1686_v44 = vld [vmem:[#allocation7 + $0x120] ss:$16 sps:$4 sm:$0xff]  }
  0x8e   :  { %653 = vmatpush1.bf16.msra.mxu0 %v1635_v15  ;;  %v1685_v45 = vld [vmem:[#allocation7 + $0x12c] ss:$16 sps:$4 sm:$0xff]   ;;  %v1687_v46 = vld [vmem:[#allocation7 + $0x144] ss:$16 sps:$4 sm:$0xff]   ;;  %v1683_v47 = vld [vmem:[#allocation7 + $0x128] ss:$16 sps:$4 sm:$0xff]  }
  0x8f   :  { %654 = vmatprep.subr.bf16.mxu0 %v1643_v16  ;;  %616 = vmatpush1.bf16.msra.mxu1 %v1650_v21  ;;  %v1692_v48 = vld [vmem:[#allocation7 + $0x140] ss:$16 sps:$4 sm:$0xff]   ;;  %v1691_v49 = vld [vmem:[#allocation7 + $0x14c] ss:$16 sps:$4 sm:$0xff]   ;;  %v1693_v50 = vld [vmem:[#allocation7 + $0x164] ss:$16 sps:$4 sm:$0xff]  }
  0x90   :  { %617 = vmatprep.subr.bf16.mxu1 %v1651_v22  ;;  %v1689_v51 = vld [vmem:[#allocation7 + $0x148] ss:$16 sps:$4 sm:$0xff]   ;;  %v1698_v52 = vld [vmem:[#allocation7 + $0x160] ss:$16 sps:$4 sm:$0xff]   ;;  %v1697_v53 = vld [vmem:[#allocation7 + $0x16c] ss:$16 sps:$4 sm:$0xff]  }
  0x91   :  { %v1699_v54 = vld [vmem:[#allocation7 + $0x184] ss:$16 sps:$4 sm:$0xff]   ;;  %v1695_v55 = vld [vmem:[#allocation7 + $0x168] ss:$16 sps:$4 sm:$0xff]   ;;  %v1704_v56 = vld [vmem:[#allocation7 + $0x180] ss:$16 sps:$4 sm:$0xff]  }
  0x92   :  { %655 = vmatpush1.bf16.msra.mxu0 %v1641_v19  ;;  %v1703_v57 = vld [vmem:[#allocation7 + $0x18c] ss:$16 sps:$4 sm:$0xff]   ;;  %v1705_v58 = vld [vmem:[#allocation7 + $0x1a4] ss:$16 sps:$4 sm:$0xff]   ;;  %v1701_v59 = vld [vmem:[#allocation7 + $0x188] ss:$16 sps:$4 sm:$0xff]  }
  0x93   :  { %656 = vmatprep.subr.bf16.mxu0 %v1649_v20  ;;  %618 = vmatpush1.bf16.msra.mxu1 %v1656_v25  ;;  %v1710_v60 = vld [vmem:[#allocation7 + $0x1a0] ss:$16 sps:$4 sm:$0xff]   ;;  %v1709_v61 = vld [vmem:[#allocation7 + $0x1ac] ss:$16 sps:$4 sm:$0xff]   ;;  %v1707_v62 = vld [vmem:[#allocation7 + $0x1a8] ss:$16 sps:$4 sm:$0xff]  }
  0x94   :  { %619 = vmatprep.subr.bf16.mxu1 %v1657_v26  ;;  %v1711_v63 = vld [vmem:[#allocation7 + $0x1c4] ss:$16 sps:$4 sm:$0xff]   ;;  %v1715_v0 = vld [vmem:[#allocation7 + $0x1cc] ss:$16 sps:$4 sm:$0xff]   ;;  %v1713_v1 = vld [vmem:[#allocation7 + $0x1c8] ss:$16 sps:$4 sm:$0xff]  }
  0x95   :  { %v1716_v2 = vld [vmem:[#allocation7 + $0x1c0] ss:$16 sps:$4 sm:$0xff]   ;;  %v1717_v3 = vld [vmem:[#allocation7 + $0x1e4] ss:$16 sps:$4 sm:$0xff]   ;;  %v1721_v4 = vld [vmem:[#allocation7 + $0x1ec] ss:$16 sps:$4 sm:$0xff]  }
  0x96   :  { %657 = vmatpush1.bf16.msra.mxu0 %v1647_v23  ;;  %v1719_v5 = vld [vmem:[#allocation7 + $0x1e8] ss:$16 sps:$4 sm:$0xff]   ;;  %v1722_v6 = vld [vmem:[#allocation7 + $0x1e0] ss:$16 sps:$4 sm:$0xff]   ;;  %v1725_v7 = vld [vmem:[#allocation8 + $0x4] ss:$8 sps:$4 sm:$0xff]  }
  0x97   :  { %658 = vmatprep.subr.bf16.mxu0 %v1655_v24  ;;  %620 = vmatpush1.bf16.msra.mxu1 %v1662_v29  ;;  %v1728_v8 = vld [vmem:[#allocation10 + $0x4] ss:$8 sps:$4 sm:$0xff]   ;;  %v2199_v10 = vshrl.u32 %v132_v9, 7  ;;  %v1723_v25 = vld [vmem:[#allocation8] ss:$8 sps:$4 sm:$0xff]   ;;  %s1417_s16 = sshll.u32 %s2059_s6, 4  ;;  %s1418_s16 = int_to_ptr.vmem [resolvable:$true] %s1417_s16 }
  0x98   :  { %621 = vmatprep.subr.bf16.mxu1 %v1663_v30  ;;  %v2202_v12 = vld [vmem:[#allocation13] sm:$0xff]  ;;  %v2204_v13 = vld [vmem:[#allocation13 + $0x8] sm:$0xff]  ;;  %v1734_v29 = vld [vmem:[#allocation10 + $0x14] ss:$8 sps:$4 sm:$0xff]   ;;  %s1989_s23 = scalar_lea.vmem %s1418_s16, 16  ;;  %s1993_s24 = scalar_lea.vmem %s1418_s16, 32 }
  0x99   :  { %v134_v11 = vsub.s32 1, %v2199_v10  ;;  %v1726_v26 = vld [vmem:[#allocation10] ss:$8 sps:$4 sm:$0xff]   ;;  %v1729_v30 = vld [vmem:[#allocation8 + $0x10] ss:$8 sps:$4 sm:$0xff]   ;;  %vm1390_vm1 = vcmp.lt.s32.totalorder %v2199_v10, 2  ;;  %p1990_p0 = scmp.ne.s32.totalorder %s1418_s16, %s1989_s23  ;;  %p1994_p1 = scmp.lt.s32.totalorder %s1418_s16, %s1418_s16 }
  0x9a   :  { %659 = vmatpush1.bf16.msra.mxu0 %v1653_v27  ;;  %v1800_v9 = vld [vmem:[#allocation10 + $0xc4] ss:$8 sps:$4 sm:$0xff]   ;;  %p1995_p2 = scmp.lt.s32.totalorder %s1993_s24, %s1989_s23 }
  0x9b   :  { %660 = vmatprep.subr.bf16.mxu0 %v1661_v28  ;;  %622 = vmatpush1.bf16.msra.mxu1 %v1668_v33  ;;  %v135_v14 = vrot.slane %v2202_v12, %v134_v11  ;;  %v139_v15 = vrot.slane %v2204_v13, %v134_v11  ;;  %v1731_v28 = vld [vmem:[#allocation8 + $0x14] ss:$8 sps:$4 sm:$0xff]   ;;  %v1740_v33 = vld [vmem:[#allocation10 + $0x24] ss:$8 sps:$4 sm:$0xff]   ;;  %v1795_v11 = vld [vmem:[#allocation8 + $0xc0] ss:$8 sps:$4 sm:$0xff]  }
  0x9c   :  { %623 = vmatprep.subr.bf16.mxu1 %v1669_v34  ;;  %v1735_v34 = vld [vmem:[#allocation8 + $0x20] ss:$8 sps:$4 sm:$0xff]   ;;  %p1996_p3 = por %p1995_p2, %p1994_p1 }
  0x9e   :  { %661 = vmatpush1.bf16.msra.mxu0 %v1659_v31  ;;  %v1732_v31 = vld [vmem:[#allocation10 + $0x10] ss:$8 sps:$4 sm:$0xff]   ;;  %p1997_p4 = pnand %p1996_p3, %p1990_p0 }
  0x9f   :  { %662 = vmatprep.subr.bf16.mxu0 %v1667_v32  ;;  %624 = vmatpush1.bf16.msra.mxu1 %v1674_v37  ;;  %v1737_v32 = vld [vmem:[#allocation8 + $0x24] ss:$8 sps:$4 sm:$0xff]   ;;  %v1746_v37 = vld [vmem:[#allocation10 + $0x34] ss:$8 sps:$4 sm:$0xff]  }
  0xa0   :  { %625 = vmatprep.subr.bf16.mxu1 %v1675_v38  ;;  %v1741_v38 = vld [vmem:[#allocation8 + $0x30] ss:$8 sps:$4 sm:$0xff]  }
  0xa2   :  { %663 = vmatpush1.bf16.msra.mxu0 %v1665_v35  ;;  %v1738_v35 = vld [vmem:[#allocation10 + $0x20] ss:$8 sps:$4 sm:$0xff]  }
  0xa3   :  { %664 = vmatprep.subr.bf16.mxu0 %v1673_v36  ;;  %626 = vmatpush1.bf16.msra.mxu1 %v1680_v41  ;;  %v1743_v36 = vld [vmem:[#allocation8 + $0x34] ss:$8 sps:$4 sm:$0xff]   ;;  %v1752_v41 = vld [vmem:[#allocation10 + $0x44] ss:$8 sps:$4 sm:$0xff]  }
  0xa4   :  { %627 = vmatprep.subr.bf16.mxu1 %v1681_v42  ;;  %v1747_v42 = vld [vmem:[#allocation8 + $0x40] ss:$8 sps:$4 sm:$0xff]  }
  0xa6   :  { %665 = vmatpush1.bf16.msra.mxu0 %v1671_v39  ;;  %v1744_v39 = vld [vmem:[#allocation10 + $0x30] ss:$8 sps:$4 sm:$0xff]  }
  0xa7   :  { %666 = vmatprep.subr.bf16.mxu0 %v1679_v40  ;;  %628 = vmatpush1.bf16.msra.mxu1 %v1686_v44  ;;  %v1749_v40 = vld [vmem:[#allocation8 + $0x44] ss:$8 sps:$4 sm:$0xff]   ;;  %v1755_v44 = vld [vmem:[#allocation8 + $0x54] ss:$8 sps:$4 sm:$0xff]  }
  0xa8   :  { %629 = vmatprep.subr.bf16.mxu1 %v1687_v46  ;;  %v1753_v46 = vld [vmem:[#allocation8 + $0x50] ss:$8 sps:$4 sm:$0xff]  }
  0xaa   :  { %667 = vmatpush1.bf16.msra.mxu0 %v1677_v43  ;;  %v1750_v43 = vld [vmem:[#allocation10 + $0x40] ss:$8 sps:$4 sm:$0xff]  }
  0xab   :  { %668 = vmatprep.subr.bf16.mxu0 %v1685_v45  ;;  %630 = vmatpush1.bf16.msra.mxu1 %v1692_v48  ;;  %v1758_v45 = vld [vmem:[#allocation10 + $0x54] ss:$8 sps:$4 sm:$0xff]   ;;  %v1761_v48 = vld [vmem:[#allocation8 + $0x64] ss:$8 sps:$4 sm:$0xff]  }
  0xac   :  { %631 = vmatprep.subr.bf16.mxu1 %v1693_v50  ;;  %v1759_v50 = vld [vmem:[#allocation8 + $0x60] ss:$8 sps:$4 sm:$0xff]  }
  0xae   :  { %669 = vmatpush1.bf16.msra.mxu0 %v1683_v47  ;;  %v1756_v47 = vld [vmem:[#allocation10 + $0x50] ss:$8 sps:$4 sm:$0xff]  }
  0xaf   :  { %670 = vmatprep.subr.bf16.mxu0 %v1691_v49  ;;  %632 = vmatpush1.bf16.msra.mxu1 %v1698_v52  ;;  %v1764_v49 = vld [vmem:[#allocation10 + $0x64] ss:$8 sps:$4 sm:$0xff]   ;;  %v1767_v52 = vld [vmem:[#allocation8 + $0x74] ss:$8 sps:$4 sm:$0xff]  }
  0xb0   :  { %633 = vmatprep.subr.bf16.mxu1 %v1699_v54  ;;  %v1765_v54 = vld [vmem:[#allocation8 + $0x70] ss:$8 sps:$4 sm:$0xff]  }
  0xb2   :  { %671 = vmatpush1.bf16.msra.mxu0 %v1689_v51  ;;  %v1762_v51 = vld [vmem:[#allocation10 + $0x60] ss:$8 sps:$4 sm:$0xff]  }
  0xb3   :  { %672 = vmatprep.subr.bf16.mxu0 %v1697_v53  ;;  %634 = vmatpush1.bf16.msra.mxu1 %v1704_v56  ;;  %v1770_v53 = vld [vmem:[#allocation10 + $0x74] ss:$8 sps:$4 sm:$0xff]   ;;  %v1773_v56 = vld [vmem:[#allocation8 + $0x84] ss:$8 sps:$4 sm:$0xff]  }
  0xb4   :  { %635 = vmatprep.subr.bf16.mxu1 %v1705_v58  ;;  %v1771_v58 = vld [vmem:[#allocation8 + $0x80] ss:$8 sps:$4 sm:$0xff]  }
  0xb6   :  { %673 = vmatpush1.bf16.msra.mxu0 %v1695_v55  ;;  %v1768_v55 = vld [vmem:[#allocation10 + $0x70] ss:$8 sps:$4 sm:$0xff]  }
  0xb7   :  { %674 = vmatprep.subr.bf16.mxu0 %v1703_v57  ;;  %636 = vmatpush1.bf16.msra.mxu1 %v1710_v60  ;;  %v1776_v57 = vld [vmem:[#allocation10 + $0x84] ss:$8 sps:$4 sm:$0xff]   ;;  %v1779_v60 = vld [vmem:[#allocation8 + $0x94] ss:$8 sps:$4 sm:$0xff]  }
  0xb8   :  { %637 = vmatprep.subr.bf16.mxu1 %v1711_v63  ;;  %v1780_v63 = vld [vmem:[#allocation10 + $0x90] ss:$8 sps:$4 sm:$0xff]  }
  0xba   :  { %675 = vmatpush1.bf16.msra.mxu0 %v1701_v59  ;;  %v1774_v59 = vld [vmem:[#allocation10 + $0x80] ss:$8 sps:$4 sm:$0xff]  }
  0xbb   :  { %676 = vmatprep.subr.bf16.mxu0 %v1709_v61  ;;  %638 = vmatpush1.bf16.msra.mxu1 %v1716_v2  ;;  %v1782_v61 = vld [vmem:[#allocation10 + $0x94] ss:$8 sps:$4 sm:$0xff]   ;;  %v1783_v2 = vld [vmem:[#allocation8 + $0xa0] ss:$8 sps:$4 sm:$0xff]  }
  0xbc   :  { %639 = vmatprep.subr.bf16.mxu1 %v1717_v3  ;;  %v1786_v3 = vld [vmem:[#allocation10 + $0xa0] ss:$8 sps:$4 sm:$0xff]  }
  0xbe   :  { %677 = vmatpush1.bf16.msra.mxu0 %v1707_v62  ;;  %v1777_v62 = vld [vmem:[#allocation8 + $0x90] ss:$8 sps:$4 sm:$0xff]  }
  0xbf   :  { %678 = vmatprep.subr.bf16.mxu0 %v1715_v0  ;;  %640 = vmatpush1.bf16.msra.mxu1 %v1722_v6  ;;  %v1785_v0 = vld [vmem:[#allocation8 + $0xa4] ss:$8 sps:$4 sm:$0xff]   ;;  %v1789_v6 = vld [vmem:[#allocation8 + $0xb0] ss:$8 sps:$4 sm:$0xff]  }
  0xc0   :  { %897 = vmatprep.subr.bf16.mxu1 %v1725_v7  ;;  %v1792_v7 = vld [vmem:[#allocation10 + $0xb0] ss:$8 sps:$4 sm:$0xff]  }
  0xc2   :  { %679 = vmatpush1.bf16.msra.mxu0 %v1713_v1  ;;  %v1788_v1 = vld [vmem:[#allocation10 + $0xa4] ss:$8 sps:$4 sm:$0xff]  }
  0xc3   :  { %680 = vmatprep.subr.bf16.mxu0 %v1721_v4  ;;  %v1791_v4 = vld [vmem:[#allocation8 + $0xb4] ss:$8 sps:$4 sm:$0xff]  }
  0xc6   :  { %681 = vmatpush1.bf16.msra.mxu0 %v1719_v5  ;;  %v1794_v5 = vld [vmem:[#allocation10 + $0xb4] ss:$8 sps:$4 sm:$0xff]  }
  0xc7   :  { %1142 = vmatprep.subr.bf16.mxu0 %v1728_v8  ;;  %v1797_v8 = vld [vmem:[#allocation8 + $0xc4] ss:$8 sps:$4 sm:$0xff]  }
 0x15c   :  { %v198_v16 = vpop.f32.mrb[0].mxu0 }
 0x15d   :  { %v199_v17 = vadd.f32 %v198_v16, %v135_v14  ;;  %v200_v18 = vpop.f32.mrb[1].mxu0  ;;  %v1798_v14 = vld [vmem:[#allocation10 + $0xc0] ss:$8 sps:$4 sm:$0xff]   ;;  %v1806_v16 = vld [vmem:[#allocation10 + $0xd4] ss:$8 sps:$4 sm:$0xff]  }
 0x15e   :  { %v201_v19 = vadd.f32 %v200_v18, %v139_v15  ;;  %v202_v20 = vpop.f32.mrb[2].mxu0  ;;  %v1803_v15 = vld [vmem:[#allocation8 + $0xd4] ss:$8 sps:$4 sm:$0xff]   ;;  %v1804_v18 = vld [vmem:[#allocation10 + $0xd0] ss:$8 sps:$4 sm:$0xff]  }
 0x15f   :  { %v205_v21 = vmax.f32 %v199_v17, 0.0  ;;  %v203_v22 = vpop.f32.mrb[3].mxu0  ;;  %v1801_v17 = vld [vmem:[#allocation8 + $0xd0] ss:$8 sps:$4 sm:$0xff]   ;;  %v1812_v20 = vld [vmem:[#allocation10 + $0xe4] ss:$8 sps:$4 sm:$0xff]  }
 0x160   :  { %v206_v23 = vmax.f32 %v201_v19, 0.0  ;;  %v1809_v19 = vld [vmem:[#allocation8 + $0xe4] ss:$8 sps:$4 sm:$0xff]   ;;  %v1810_v22 = vld [vmem:[#allocation10 + $0xe0] ss:$8 sps:$4 sm:$0xff]  }
 0x161   :  { %v207_v27 = vpack.c.bf16 %v205_v21, %v205_v21  ;;  %v1807_v21 = vld [vmem:[#allocation8 + $0xe0] ss:$8 sps:$4 sm:$0xff]  }
 0x162   :  { %v208_v24 = vpack.c.bf16 %v206_v23, %v206_v23  ;;  %v1815_v23 = vld [vmem:[#allocation8 + $0xf4] ss:$8 sps:$4 sm:$0xff]  }
 0x164   :  { %641 = vmatprep.mubr.bf16.mxu1 %v208_v24  ;;  %682 = vmatprep.mubr.bf16.mxu0 %v208_v24  ;;  %v1818_v24 = vld [vmem:[#allocation10 + $0xf4] ss:$8 sps:$4 sm:$0xff]  }
 0x165   :  { %642 = vmatmul.mubr.bf16.vlgmr.msra.gmra.mrb[0].mxu1 %v207_v27  ;;  %683 = vmatmul.mubr.bf16.vlgmr.msra.gmra.mrb[4].mxu0 %v207_v27  ;;  %v1819_v27 = vld [vmem:[#allocation11 + $0x40] sm:$0xff]  }
 0x166   :  { %898 = vmatpush1.bf16.msra.mxu1 %v1723_v25  ;;  %1143 = vmatpush1.bf16.msra.mxu0 %v1726_v26  ;;  %v1813_v25 = vld [vmem:[#allocation8 + $0xf0] ss:$8 sps:$4 sm:$0xff]  }
 0x167   :  { %899 = vmatprep.subr.bf16.mxu1 %v1731_v28  ;;  %1144 = vmatprep.subr.bf16.mxu0 %v1734_v29  ;;  %v1816_v26 = vld [vmem:[#allocation10 + $0xf0] ss:$8 sps:$4 sm:$0xff]   ;;  %v275_v28 = vsub.s32 0, %v2199_v10 }
 0x168   :  { %v124_v29 = vld [vmem:[#allocation13 + $0x10] sm:$0xff] }
 0x16a   :  { %900 = vmatpush1.bf16.msra.mxu1 %v1729_v30  ;;  %1145 = vmatpush1.bf16.msra.mxu0 %v1732_v31  ;;  %v125_v30 = vld [vmem:[#allocation13 + $0x18] sm:$0xff]  ;;  %v276_v31 = vrot.slane %v2202_v12, %v275_v28 }
 0x16b   :  { %901 = vmatprep.subr.bf16.mxu1 %v1737_v32  ;;  %1146 = vmatprep.subr.bf16.mxu0 %v1740_v33  ;;  %v284_v32 = vrot.slane %v124_v29, %v275_v28  ;;  %v280_v33 = vrot.slane %v2204_v13, %v275_v28 }
 0x16e   :  { %902 = vmatpush1.bf16.msra.mxu1 %v1735_v34  ;;  %1147 = vmatpush1.bf16.msra.mxu0 %v1738_v35  ;;  %v288_v34 = vrot.slane %v125_v30, %v275_v28 }
 0x16f   :  { %903 = vmatprep.subr.bf16.mxu1 %v1743_v36  ;;  %1148 = vmatprep.subr.bf16.mxu0 %v1746_v37 }
 0x172   :  { %904 = vmatpush1.bf16.msra.mxu1 %v1741_v38  ;;  %1149 = vmatpush1.bf16.msra.mxu0 %v1744_v39 }
 0x173   :  { %905 = vmatprep.subr.bf16.mxu1 %v1749_v40  ;;  %1150 = vmatprep.subr.bf16.mxu0 %v1752_v41 }
 0x176   :  { %906 = vmatpush1.bf16.msra.mxu1 %v1747_v42  ;;  %1151 = vmatpush1.bf16.msra.mxu0 %v1750_v43 }
 0x177   :  { %907 = vmatprep.subr.bf16.mxu1 %v1755_v44  ;;  %1152 = vmatprep.subr.bf16.mxu0 %v1758_v45 }
 0x17a   :  { %908 = vmatpush1.bf16.msra.mxu1 %v1753_v46  ;;  %1153 = vmatpush1.bf16.msra.mxu0 %v1756_v47 }
 0x17b   :  { %909 = vmatprep.subr.bf16.mxu1 %v1761_v48  ;;  %1154 = vmatprep.subr.bf16.mxu0 %v1764_v49 }
 0x17e   :  { %910 = vmatpush1.bf16.msra.mxu1 %v1759_v50  ;;  %1155 = vmatpush1.bf16.msra.mxu0 %v1762_v51 }
 0x17f   :  { %911 = vmatprep.subr.bf16.mxu1 %v1767_v52  ;;  %1156 = vmatprep.subr.bf16.mxu0 %v1770_v53  ;;  %v1820_v53 = vld [vmem:[#allocation11] sm:$0xff]  }
 0x182   :  { %912 = vmatpush1.bf16.msra.mxu1 %v1765_v54  ;;  %1157 = vmatpush1.bf16.msra.mxu0 %v1768_v55 }
 0x183   :  { %913 = vmatprep.subr.bf16.mxu1 %v1773_v56  ;;  %1158 = vmatprep.subr.bf16.mxu0 %v1776_v57  ;;  %v1821_v56 = vld [vmem:[#allocation11 + $0x48] sm:$0xff]  }
 0x184   :  { %v1822_v57 = vld [vmem:[#allocation11 + $0x8] sm:$0xff]  }
 0x186   :  { %914 = vmatpush1.bf16.msra.mxu1 %v1771_v58  ;;  %1159 = vmatpush1.bf16.msra.mxu0 %v1774_v59  ;;  %v1823_v58 = vld [vmem:[#allocation11 + $0x50] sm:$0xff]  }
 0x187   :  { %915 = vmatprep.subr.bf16.mxu1 %v1779_v60  ;;  %1160 = vmatprep.subr.bf16.mxu0 %v1782_v61  ;;  %v1824_v59 = vld [vmem:[#allocation11 + $0x10] sm:$0xff]   ;;  %v1825_v60 = vld [vmem:[#allocation11 + $0x58] sm:$0xff]  }
 0x188   :  { %v1826_v61 = vld [vmem:[#allocation11 + $0x18] sm:$0xff]  }
 0x18a   :  { %916 = vmatpush1.bf16.msra.mxu1 %v1777_v62  ;;  %1161 = vmatpush1.bf16.msra.mxu0 %v1780_v63  ;;  %v1827_v62 = vld [vmem:[#allocation11 + $0x60] sm:$0xff]  }
 0x18b   :  { %917 = vmatprep.subr.bf16.mxu1 %v1785_v0  ;;  %1162 = vmatprep.subr.bf16.mxu0 %v1788_v1  ;;  %v1828_v63 = vld [vmem:[#allocation11 + $0x20] sm:$0xff]   ;;  %v1829_v0 = vld [vmem:[#allocation11 + $0x68] sm:$0xff]  }
 0x18c   :  { %v1830_v1 = vld [vmem:[#allocation11 + $0x28] sm:$0xff]  }
 0x18e   :  { %918 = vmatpush1.bf16.msra.mxu1 %v1783_v2  ;;  %1163 = vmatpush1.bf16.msra.mxu0 %v1786_v3  ;;  %v1831_v2 = vld [vmem:[#allocation11 + $0x70] sm:$0xff]  }
 0x18f   :  { %919 = vmatprep.subr.bf16.mxu1 %v1791_v4  ;;  %1164 = vmatprep.subr.bf16.mxu0 %v1794_v5  ;;  %v1832_v3 = vld [vmem:[#allocation11 + $0x30] sm:$0xff]   ;;  %v1833_v4 = vld [vmem:[#allocation11 + $0x78] sm:$0xff]  }
 0x190   :  { %v1834_v5 = vld [vmem:[#allocation11 + $0x38] sm:$0xff]  }
 0x192   :  { %920 = vmatpush1.bf16.msra.mxu1 %v1789_v6  ;;  %1165 = vmatpush1.bf16.msra.mxu0 %v1792_v7  ;;  %v731_v6 = vsub.s32 2, %v2199_v10  ;;  %v976_v7 = vsub.s32 3, %v2199_v10 }
 0x193   :  { %921 = vmatprep.subr.bf16.mxu1 %v1797_v8  ;;  %1166 = vmatprep.subr.bf16.mxu0 %v1800_v9 }
 0x194   :  { %v732_v8 = vrot.slane %v2202_v12, %v731_v6  ;;  %v977_v9 = vrot.slane %v2202_v12, %v976_v7 }
 0x196   :  { %922 = vmatpush1.bf16.msra.mxu1 %v1795_v11  ;;  %1167 = vmatpush1.bf16.msra.mxu0 %v1798_v14  ;;  %v1361_v11 = vsub.s32 6, %v2199_v10  ;;  %v736_v14 = vrot.slane %v2204_v13, %v731_v6 }
 0x197   :  { %923 = vmatprep.subr.bf16.mxu1 %v1803_v15  ;;  %1168 = vmatprep.subr.bf16.mxu0 %v1806_v16  ;;  %v981_v15 = vrot.slane %v2204_v13, %v976_v7 }
 0x19a   :  { %924 = vmatpush1.bf16.msra.mxu1 %v1801_v17  ;;  %1169 = vmatpush1.bf16.msra.mxu0 %v1804_v18 }
 0x19b   :  { %925 = vmatprep.subr.bf16.mxu1 %v1809_v19  ;;  %1170 = vmatprep.subr.bf16.mxu0 %v1812_v20 }
 0x19e   :  { %926 = vmatpush1.bf16.msra.mxu1 %v1807_v21  ;;  %1171 = vmatpush1.bf16.msra.mxu0 %v1810_v22  ;;  %v1362_v22 = vrot.slane %v2202_v12, %v1361_v11 }
 0x19f   :  { %927 = vmatprep.subr.bf16.mxu1 %v1815_v23  ;;  %1172 = vmatprep.subr.bf16.mxu0 %v1818_v24 }
 0x1a2   :  { %928 = vmatpush1.bf16.msra.mxu1 %v1813_v25  ;;  %1173 = vmatpush1.bf16.msra.mxu0 %v1816_v26 }
 0x1a3   :  { %1582 = vmatprep.subr.bf16.mxu1 %v1819_v27  ;;  %v1366_v27 = vrot.slane %v2204_v13, %v1361_v11 }
 0x238   :  { %v643_v35 = vpop.f32.mrb[0].mxu1  ;;  %v684_v36 = vpop.f32.mrb[4].mxu0 }
 0x239   :  { %v644_v37 = vadd.f32 %v643_v35, %v276_v31  ;;  %v685_v38 = vadd.f32 %v684_v36, %v284_v32  ;;  %v645_v39 = vpop.f32.mrb[1].mxu1  ;;  %v686_v40 = vpop.f32.mrb[5].mxu0 }
 0x23a   :  { %v646_v41 = vadd.f32 %v645_v39, %v280_v33  ;;  %v687_v42 = vadd.f32 %v686_v40, %v288_v34  ;;  %v647_v43 = vpop.f32.mrb[2].mxu1  ;;  %v688_v44 = vpop.f32.mrb[6].mxu0  ;;  %v1374_v39 = vsub.s32 5, %v2199_v10 }
 0x23b   :  { %v691_v45 = vmax.f32 %v644_v37, 0.0  ;;  %v693_v46 = vmax.f32 %v685_v38, 0.0  ;;  %v648_v47 = vpop.f32.mrb[3].mxu1  ;;  %v689_v48 = vpop.f32.mrb[7].mxu0 }
 0x23c   :  { %v692_v49 = vmax.f32 %v646_v41, 0.0  ;;  %v694_v50 = vmax.f32 %v687_v42, 0.0  ;;  %v1375_v40 = vrot.slane %v2202_v12, %v1374_v39  ;;  %v1221_v42 = vsub.s32 4, %v2199_v10 }
 0x23d   :  { %v695_v54 = vpack.c.bf16 %v691_v45, %v691_v45  ;;  %v940_v55 = vpack.c.bf16 %v693_v46, %v693_v46 }
 0x23e   :  { %v696_v51 = vpack.c.bf16 %v692_v49, %v692_v49  ;;  %v941_v52 = vpack.c.bf16 %v694_v50, %v694_v50  ;;  %v1222_v44 = vrot.slane %v2202_v12, %v1221_v42 }
 0x240   :  { %929 = vmatprep.mubr.bf16.mxu1 %v696_v51  ;;  %1174 = vmatprep.mubr.bf16.mxu0 %v941_v52 }
 0x241   :  { %930 = vmatmul.mubr.bf16.vlgmr.msra.gmra.mrb[4].mxu1 %v695_v54  ;;  %1175 = vmatmul.mubr.bf16.vlgmr.msra.gmra.mrb[8].mxu0 %v940_v55 }
 0x242   :  { %1583 = vmatpush3.bf16.msra.mxu1 %v1820_v53 }
 0x243   :  { %1584 = vmatprep.subr.bf16.mxu1 %v1821_v56 }
 0x246   :  { %1585 = vmatpush3.bf16.msra.mxu1 %v1822_v57 }
 0x247   :  { %1586 = vmatprep.subr.bf16.mxu1 %v1823_v58 }
 0x24a   :  { %1587 = vmatpush3.bf16.msra.mxu1 %v1824_v59 }
 0x24b   :  { %1588 = vmatprep.subr.bf16.mxu1 %v1825_v60 }
 0x24e   :  { %1589 = vmatpush3.bf16.msra.mxu1 %v1826_v61 }
 0x24f   :  { %1590 = vmatprep.subr.bf16.mxu1 %v1827_v62 }
 0x252   :  { %1591 = vmatpush3.bf16.msra.mxu1 %v1828_v63 }
 0x253   :  { %1592 = vmatprep.subr.bf16.mxu1 %v1829_v0 }
 0x256   :  { %1593 = vmatpush3.bf16.msra.mxu1 %v1830_v1 }
 0x257   :  { %1594 = vmatprep.subr.bf16.mxu1 %v1831_v2 }
 0x25a   :  { %1595 = vmatpush3.bf16.msra.mxu1 %v1832_v3 }
 0x25b   :  { %1596 = vmatprep.subr.bf16.mxu1 %v1833_v4 }
 0x25e   :  { %1597 = vmatpush3.bf16.msra.mxu1 %v1834_v5 }
 0x314   :  { %v931_v16 = vpop.f32.mrb[4].mxu1  ;;  %v1176_v17 = vpop.f32.mrb[8].mxu0 }
 0x315   :  { %v932_v18 = vadd.f32 %v931_v16, %v732_v8  ;;  %v1177_v19 = vadd.f32 %v1176_v17, %v977_v9  ;;  %v933_v20 = vpop.f32.mrb[5].mxu1  ;;  %v1178_v21 = vpop.f32.mrb[9].mxu0 }
 0x316   :  { %v934_v23 = vadd.f32 %v933_v20, %v736_v14  ;;  %v1179_v24 = vadd.f32 %v1178_v21, %v981_v15  ;;  %v935_v25 = vpop.f32.mrb[6].mxu1  ;;  %v1180_v26 = vpop.f32.mrb[10].mxu0 }
 0x317   :  { %v938_v28 = vmax.f32 %v932_v18, 0.0  ;;  %v1183_v29 = vmax.f32 %v1177_v19, 0.0  ;;  %v936_v30 = vpop.f32.mrb[7].mxu1  ;;  %v1181_v31 = vpop.f32.mrb[11].mxu0 }
 0x318   :  { %v939_v32 = vmax.f32 %v934_v23, 0.0  ;;  %v1184_v33 = vmax.f32 %v1179_v24, 0.0 }
 0x319   :  { %v1367_v34 = vmul.f32 %v1362_v22, %v1183_v29  ;;  %v1185_v37 = vpack.c.bf16 %v938_v28, %v938_v28 }
 0x31a   :  { %v1186_v35 = vpack.c.bf16 %v939_v32, %v939_v32  ;;  %v1368_v36 = vmul.f32 %v1366_v27, %v1184_v33 }
 0x31c   :  { %1351 = vmatprep.mubr.bf16.mxu1 %v1186_v35  ;;  %v1369_v38 = vadd.f32 %v1368_v36, %v1367_v34 }
 0x31d   :  { %1352 = vmatmul.mubr.bf16.vlgmr.msra.gmra.mrb[8].mxu1 %v1185_v37 }
 0x31e   :  { %1370 = vadd.xlane.f32.xlu0 %v1369_v38 }
 0x3ab   :  { %v1371_v41 = vpop.xlane.xlu0 %1370 }
 0x3ac   :  { %v1376_v13 = vadd.f32 %v1375_v40, %v1371_v41 }
 0x3ae   :  { %1379 = vperm.xlu0 %1620, %v1376_v13  }
 0x3f0   :  { %v1598_v43 = vpop.f32.mrb[8].mxu1 }
 0x3f1   :  { %v1599_v45 = vpop.f32.mrb[9].mxu1 }
 0x3f2   :  { %v1600_v46 = vadd.f32 %v1599_v45, %v1598_v43  ;;  %v1601_v47 = vpop.f32.mrb[10].mxu1 }
 0x3f3   :  { %v1602_v48 = vpop.f32.mrb[11].mxu1 }
 0x3f4   :  { %v1354_v49 = vadd.f32 %v1600_v46, %v1222_v44 }
 0x3f6   :  { %v1393_v50 = vsel %vm1390_vm1, %v1354_v49, 0.0 }
 0x3f7   :  { %v1394_v51 = vrot.slane %v1393_v50, 4 }
 0x3f9   :  { %v1395_v52 = vadd.f32 %v1394_v51, %v1393_v50 }
 0x3fb   :  { %v1396_v53 = vrot.slane %v1395_v52, 2 }
 0x3fd   :  { %v1397_v54 = vadd.f32 %v1396_v53, %v1395_v52 }
 0x3ff   :  { %v1398_v55 = vrot.slane %v1397_v54, 1 }
 0x401   :  { %v1399_v56 = vadd.f32 %v1398_v55, %v1397_v54 }
 0x403   :  { %1400 = vst [vmem:[#allocation15] sm:$0x1] %v1399_v56 }
 0x404   :  { %2000 = shalt.err (!%p1997_p4)
}
 0x405   :  { %s2001_s29 = scalar_lea.hbm %s2257_s8, 16 }
 0x406   :  { %p2002_p5 = scmp.ne.s32.totalorder %s2257_s8, %s2001_s29  ;;  %p2005_p6 = scmp.lt.u32.totalorder %s2001_s29, %s2257_s8 }
 0x408   :  { %p2007_p7 = pnand %p2005_p6, %p2002_p5 }
 0x40a   :  { %2010 = shalt.err (!%p2007_p7)
}
 0x40b   :  { %1420 = dma.vmem_to_hbm [thread:$0]  %s1418_s16, 16, %s2257_s8, [#allocation16]   ;;  %vm1383_vm2 = vcmask 64512  }
 0x40c   :  { %s2060_s5 = smov [#allocation14]  }
 0x40d   :  { %s1407_s22 = sshll.u32 %s2060_s5, 4  ;;  %s1408_s22 = int_to_ptr.vmem [resolvable:$true] %s1407_s22 }
 0x40e   :  { %s2011_s12 = scalar_lea.vmem %s1408_s22, 128  ;;  %p2016_p9 = scmp.lt.s32.totalorder %s1408_s22, %s1408_s22 }
 0x40f   :  { %p2012_p8 = scmp.ne.s32.totalorder %s1408_s22, %s2011_s12  ;;  %p2017_p10 = scmp.lt.s32.totalorder %s2011_s12, %s2011_s12 }
 0x411   :  { %p2018_p11 = por %p2017_p10, %p2016_p9 }
 0x413   :  { %p2019_p12 = pnand %p2018_p11, %p2012_p8 }
 0x42d   :  { %v1380_v10 = vpop.permute.xlu0 %1379 }
 0x42e   :  { %v1382_v12 = vadd.f32 %v1380_v10, %v1354_v49 }
 0x430   :  { %1384 = vst.msk [vmem:[#allocation14] sm:$0xff] %vm1383_vm2, %v1382_v12 }
 0x431   :  { %2022 = shalt.err (!%p2019_p12)
}
 0x432   :  { %s2023_s13 = scalar_lea.hbm %s2256_s7, 128 }
 0x433   :  { %p2024_p13 = scmp.ne.s32.totalorder %s2256_s7, %s2023_s13  ;;  %p2027_p0 = scmp.lt.u32.totalorder %s2023_s13, %s2256_s7 }
 0x435   :  { %p2029_p1 = pnand %p2027_p0, %p2024_p13 }
 0x437   :  { %2032 = shalt.err (!%p2029_p1)
}
 0x438   :  { %1410 = dma.vmem_to_hbm [thread:$0]  %s1408_s22, 128, %s2256_s7, [#allocation4]  }
 0x439   :  { %2041 = dma.done.wait [#allocation4], 128  }
 0x43a   :  { %2042 = vsyncadd [#allocation4], 4294967168 }
 0x43b   :  { %2043 = dma.done.wait [#allocation16], 16  }
 0x43c   :  { %2044 = vsyncadd [#allocation16], 4294967280 }
 0x43d   :  { %1427 = vsyncpa [#allocation3], 1 }
 0x43e   :  { %1428 = vsyncpa [#allocation6], 1 }
 0x43f   :  { %1429 = vsyncpa [#allocation9], 1 }
 0x440   :  { %1430 = vsyncpa [#allocation12], 1 }
 0x441   :  { %1431 = vsyncpa [#allocation4], 1 }
 0x442   :  { %1432 = vsyncpa [#allocation16], 1 }

</bundles_post_ra>
